<compile_context>
chip_gen: v7x
topology: tpu7x:2x2x1
jax: 0.10.0
libtpu: 0.0.40
codegen_flags: <defaults>
</compile_context>

<pallas_src>
import functools

import jax
import jax.numpy as jnp
from jax.experimental import pallas as pl
from jax.experimental.pallas import tpu as pltpu


def _round_up(x, m):
    return (x + m - 1) // m * m


def _phys_bytes(rows, cols, itemsize):
    """Physical VMEM bytes of a [rows, cols] block (lane pad 128, sublane 8/16)."""
    sublane = 8 * (4 // itemsize) if itemsize < 4 else 8
    return _round_up(rows, sublane) * _round_up(cols, 128) * itemsize


def _gp_tile_kernel(alpha_ref, fake_ref, real_ref, w1_ref, b1_ref, w2t_ref,
                    gram_ref, o_ref, *, n_valid, tile_n, lipschitz):
    i = pl.program_id(0)

    fake = fake_ref[...]                                   # [tile_n, D] bf16
    real = real_ref[...]                                   # [tile_n, D] bf16
    alpha = alpha_ref[...].astype(jnp.bfloat16)            # [tile_n, 1]

    # interp = alpha*fake + (1-alpha)*real, rewritten with one fewer mul/bcast.
    # (v5e contingency: if VALU ever binds, upcast to f32 or fold the blend
    #  into the matmul; hidden under the HBM roofline at current shapes.)
    interp = real + alpha * (fake - real)                  # bf16 [tile_n, D]

    # Critic pre-activation (b2 does not affect the input gradient).
    z = jnp.dot(interp, w1_ref[...],
                preferred_element_type=jnp.float32) + b1_ref[...]   # [tile_n, H]
    h = jnp.tanh(z)                                        # EUP
    dh = 1.0 - h * h                                       # tanh'(z)
    gin = dh * w2t_ref[...]                                # [tile_n, H] f32

    # Gram trick: ||d out_n / d x_n||^2 = gin_n (W1^T W1) gin_n^T, so the
    # [tile_n, D] gradient is never materialized and no D-wide reduce is needed.
    t = jnp.dot(gin, gram_ref[...],
                preferred_element_type=jnp.float32)        # [tile_n, H]
    sq_norm = jnp.sum(t * gin, axis=1, keepdims=True)      # [tile_n, 1]

    # Forward-only loss; if this kernel is ever differentiated add an epsilon
    # under the sqrt (standard WGAN-GP uses 1e-12).
    norm = jnp.sqrt(sq_norm)
    target = norm - 1.0
    if lipschitz:
        target = jnp.maximum(target, 0.0)

    # Mask padded / ragged batch rows AFTER the sqrt (selecting 0), so any
    # NaN/Inf produced by garbage rows of an edge block cannot reach the sum.
    row = i * tile_n + jax.lax.broadcasted_iota(jnp.int32, (tile_n, 1), 0)
    t2 = jnp.where(row < n_valid, target * target, 0.0)
    partial = jnp.sum(t2)

    # Lane-dense output block; the wrapper reads lane 0 of each tile.
    o_ref[...] = jnp.full((1, 1, 128), partial, dtype=jnp.float32)


def gradient_penalty(fake, real, alpha, w1, b1, w2,
                     *, coefficient=10.0, lipschitz=False):
    """fake/real: [N, ...]; alpha: [N]; w1: [D, H]; b1: [H]; w2: [H].

    Callers should pass fake/real already in bf16 so the astype below is a
    no-op; otherwise the cast is an extra full HBM pass outside the kernel.
    """
    n = fake.shape[0]
    d = 1
    for s in fake.shape[1:]:
        d *= s
    hid = w1.shape[1]

    fake2 = fake.reshape(n, d).astype(jnp.bfloat16)
    real2 = real.reshape(n, d).astype(jnp.bfloat16)
    alpha2 = alpha.reshape(n, 1).astype(jnp.float32)

    w1_b = w1.astype(jnp.bfloat16)                         # [D, H] MXU operand
    b1r = b1.reshape(1, hid).astype(jnp.float32)
    w2t = w2.reshape(1, hid).astype(jnp.float32)
    # Gram matrix from the SAME bf16-rounded W1 used on the MXU, so the squared
    # gradient norm matches the critic actually evaluated in-kernel.
    w1_q = w1_b.astype(jnp.float32)
    gram = jnp.dot(w1_q.T, w1_q,
                   preferred_element_type=jnp.float32)     # [H, H] f32

    # ---- Generation-aware tile / VMEM budgeting ----------------------------
    try:
        vmem_capacity = int(getattr(pltpu.get_tpu_info(),
                                    "vmem_capacity_bytes", 64 << 20))
    except Exception:
        vmem_capacity = 64 << 20                           # conservative (v7x)
    if vmem_capacity >= (100 << 20):                       # v5e / v6e: 128 MiB
        stream_budget = 32 << 20
        vmem_cap = 64 << 20
    else:                                                  # v7x: 64 MiB
        stream_budget = 20 << 20
        vmem_cap = 40 << 20

    d_pad = _round_up(d, 128)
    # fake + real streams, double-buffered, bf16: 2 tensors * 2 bufs * 2 B/elt.
    max_rows = max(16, (stream_budget // (8 * d_pad)) // 16 * 16)
    tile_n = min(1024, max_rows, _round_up(max(n, 1), 16))
    tile_n = max(16, (tile_n // 16) * 16)
    if n >= 4 * 16:
        # Keep >= 4 grid steps: 2 per TensorCore on v7x megacore ("parallel"
        # batch axis) and enough steps for double-buffering to overlap.
        tile_n = min(tile_n, max(16, (n // (4 * 16)) * 16))
    num_tiles = (n + tile_n - 1) // tile_n

    # Lane-padding-aware VMEM estimate (conservative: weights double-buffered).
    stream_bytes = 2 * (2 * _phys_bytes(tile_n, d, 2)      # fake + real (bf16)
                        + _phys_bytes(tile_n, 1, 4))       # alpha
    weight_bytes = 2 * (_phys_bytes(d, hid, 2)             # W1 (bf16)
                        + 2 * _phys_bytes(1, hid, 4)       # b1, w2^T
                        + _phys_bytes(hid, hid, 4))        # Gram (f32)
    out_bytes = 2 * _phys_bytes(1, 128, 4)
    scratch_bytes = (_phys_bytes(tile_n, d, 2)             # interp
                     + 6 * _phys_bytes(tile_n, hid, 4))    # z/h/dh/gin/t/sq
    vmem_limit = int(min(vmem_cap,
                         max(stream_bytes + weight_bytes + out_bytes
                             + scratch_bytes + (4 << 20), 16 << 20)))

    rows = num_tiles * tile_n
    cost = pl.CostEstimate(
        flops=int(2 * rows * d * hid + 2 * rows * hid * hid + 8 * rows * d),
        transcendentals=int(rows * hid),
        bytes_accessed=int(2 * n * d * 2 + n * 4 + d * hid * 2
                           + hid * hid * 4 + 8 * hid + num_tiles * 128 * 4),
    )

    kernel = functools.partial(_gp_tile_kernel, n_valid=n, tile_n=tile_n,
                               lipschitz=bool(lipschitz))

    # TODO(synk): for much larger D (>~10-20K) add a K-chunking grid axis
    # ("arbitrary") accumulating z across D-chunks; not needed at D=1024.

    def _make_call(single_buffer_weights):
        def const_spec(shape):
            kwargs = {}
            if single_buffer_weights:
                # Grid-invariant blocks never need a second pipeline buffer.
                kwargs["pipeline_mode"] = pl.Buffered(1)
            return pl.BlockSpec(shape, lambda i: (0,) * len(shape), **kwargs)

        in_specs = [
            pl.BlockSpec((tile_n, 1), lambda i: (i, 0)),   # alpha (f32)
            pl.BlockSpec((tile_n, d), lambda i: (i, 0)),   # fake (bf16)
            pl.BlockSpec((tile_n, d), lambda i: (i, 0)),   # real (bf16)
            const_spec((d, hid)),                          # W1 (bf16, resident)
            const_spec((1, hid)),                          # b1
            const_spec((1, hid)),                          # w2^T
            const_spec((hid, hid)),                        # W1^T W1 (f32)
        ]
        return pl.pallas_call(
            kernel,
            out_shape=jax.ShapeDtypeStruct((num_tiles, 1, 128), jnp.float32),
            grid=(num_tiles,),
            in_specs=in_specs,
            out_specs=pl.BlockSpec((1, 1, 128), lambda i: (i, 0, 0)),
            compiler_params=pltpu.CompilerParams(
                dimension_semantics=("parallel",),
                vmem_limit_bytes=vmem_limit),
            cost_estimate=cost,
        )

    args = (alpha2, fake2, real2, w1_b, b1r, w2t, gram)
    try:
        partials = _make_call(True)(*args)
    except Exception:
        # Fallback if this jax build rejects single-buffered (Buffered(1))
        # constant blocks: use default double-buffering for the weights.
        partials = _make_call(False)(*args)

    total = jnp.sum(partials[:, 0, 0])
    return coefficient * total / n


# ----------------------------------------------------------------------------
# Pure-JAX reference (mirrors the PyTorch module with autograd.grad).
# ----------------------------------------------------------------------------
def _critic(x_flat, w1, b1, w2, b2):
    return jnp.tanh(x_flat @ w1 + b1) @ w2 + b2


def _reference(fake, real, alpha, w1, b1, w2, b2,
               coefficient=10.0, lipschitz=False):
    n = fake.shape[0]
    f = fake.reshape(n, -1).astype(jnp.float32)
    r = real.reshape(n, -1).astype(jnp.float32)
    a = alpha.reshape(n, 1).astype(jnp.float32)
    interp = a * f + (1.0 - a) * r
    grads = jax.grad(lambda x: jnp.sum(_critic(x, w1, b1, w2, b2)))(interp)
    norm = jnp.sqrt(jnp.sum(grads ** 2, axis=1))
    t = norm - 1.0
    if lipschitz:
        t = jnp.maximum(t, 0.0)
    return coefficient * jnp.mean(t ** 2)


if __name__ == "__main__":
    N, C, H, W = 2, 4, 16, 16
    D = C * H * W
    HID = 32

    key = jax.random.PRNGKey(0)
    k_fake, k_real, k_alpha, k_w1, k_b1, k_w2, k_b2 = jax.random.split(key, 7)

    fake = jax.random.normal(k_fake, (N, C, H, W), dtype=jnp.float32)
    real = jax.random.normal(k_real, (N, C, H, W), dtype=jnp.float32)
    # TODO(synk): the PyTorch module samples alpha ~ U(0,1) internally; it is an
    # explicit input here so the kernel stays deterministic / testable.
    alpha = jax.random.uniform(k_alpha, (N,), dtype=jnp.float32)

    # Deterministic critic parameters.
    w1 = jax.random.normal(k_w1, (D, HID), dtype=jnp.float32) * 0.05
    b1 = jax.random.normal(k_b1, (HID,), dtype=jnp.float32) * 0.05
    w2 = jax.random.normal(k_w2, (HID,), dtype=jnp.float32) * 0.05
    b2 = jax.random.normal(k_b2, (), dtype=jnp.float32) * 0.05  # no grad effect

    # Caller provides bf16 streams (the wrapper's astype is then a no-op).
    fake_b = fake.astype(jnp.bfloat16)
    real_b = real.astype(jnp.bfloat16)

    loss = gradient_penalty(fake_b, real_b, alpha, w1, b1, w2,
                            coefficient=10.0, lipschitz=False)
    loss = jax.block_until_ready(loss)

    # Check vs full-f32 reference (loose: accounts for bf16 streaming).
    ref = _reference(fake, real, alpha, w1, b1, w2, b2, 10.0, False)
    assert jnp.allclose(loss, ref, rtol=5e-2, atol=5e-2), (loss, ref)

    # Tighter check vs a reference built from the same bf16-rounded inputs.
    fq = fake_b.astype(jnp.float32)
    rq = real_b.astype(jnp.float32)
    aq = alpha.astype(jnp.bfloat16).astype(jnp.float32)
    wq = w1.astype(jnp.bfloat16).astype(jnp.float32)
    ref_q = _reference(fq, rq, aq, wq, b1, w2, b2, 10.0, False)
    assert jnp.allclose(loss, ref_q, rtol=2e-2, atol=2e-2), (loss, ref_q)

    # Lipschitz variant.
    loss_lp = gradient_penalty(fake_b, real_b, alpha, w1, b1, w2,
                               coefficient=10.0, lipschitz=True)
    loss_lp = jax.block_until_ready(loss_lp)
    ref_lp = _reference(fake, real, alpha, w1, b1, w2, b2, 10.0, True)
    assert jnp.allclose(loss_lp, ref_lp, rtol=5e-2, atol=5e-2), (loss_lp, ref_lp)

    print("KERNEL_OK")
</pallas_src>

<mosaic_0001>
module attributes {stable_mosaic.version = 11 : i64} {
  func.func @_gp_tile_kernel(%arg0: i32, %arg1: memref<16x1xf32, #tpu.memory_space<vmem>>, %arg2: memref<16x1024xbf16, #tpu.memory_space<vmem>>, %arg3: memref<16x1024xbf16, #tpu.memory_space<vmem>>, %arg4: memref<1024x32xbf16, #tpu.memory_space<vmem>>, %arg5: memref<1x32xf32, #tpu.memory_space<vmem>>, %arg6: memref<1x32xf32, #tpu.memory_space<vmem>>, %arg7: memref<32x32xf32, #tpu.memory_space<vmem>>, %arg8: memref<1x1x128xf32, #tpu.memory_space<vmem>>) attributes {dimension_semantics = [#tpu.dimension_semantics<parallel>], iteration_bounds = array<i64: 1>, scalar_prefetch = 0 : i64, scratch_operands = 0 : i64, tpu.core_type = #tpu.core_type<tc>, window_params = [{transform_indices = @transform_0, window_bounds = array<i64: 16, 1>}, {transform_indices = @transform_1, window_bounds = array<i64: 16, 1024>}, {transform_indices = @transform_2, window_bounds = array<i64: 16, 1024>}, {pipeline_mode = #tpu.pipeline_mode<synchronous>, transform_indices = @transform_3, window_bounds = array<i64: 1024, 32>}, {pipeline_mode = #tpu.pipeline_mode<synchronous>, transform_indices = @transform_4, window_bounds = array<i64: 1, 32>}, {pipeline_mode = #tpu.pipeline_mode<synchronous>, transform_indices = @transform_5, window_bounds = array<i64: 1, 32>}, {pipeline_mode = #tpu.pipeline_mode<synchronous>, transform_indices = @transform_6, window_bounds = array<i64: 32, 32>}, {transform_indices = @transform_7, window_bounds = array<i64: 1, 1, 128>}]} {
    %c0 = arith.constant 0 : index
    %c0_0 = arith.constant 0 : index
    %0 = vector.load %arg2[%c0, %c0_0] : memref<16x1024xbf16, #tpu.memory_space<vmem>>, vector<16x1024xbf16>
    %c0_1 = arith.constant 0 : index
    %c0_2 = arith.constant 0 : index
    %1 = vector.load %arg3[%c0_1, %c0_2] : memref<16x1024xbf16, #tpu.memory_space<vmem>>, vector<16x1024xbf16>
    %c0_3 = arith.constant 0 : index
    %c0_4 = arith.constant 0 : index
    %2 = vector.load %arg1[%c0_3, %c0_4] : memref<16x1xf32, #tpu.memory_space<vmem>>, vector<16x1xf32>
    %3 = arith.truncf %2 : vector<16x1xf32> to vector<16x1xbf16>
    %4 = arith.subf %0, %1 : vector<16x1024xbf16>
    %5 = vector.broadcast %3 : vector<16x1xbf16> to vector<16x1024xbf16>
    %6 = arith.mulf %5, %4 : vector<16x1024xbf16>
    %7 = arith.addf %1, %6 : vector<16x1024xbf16>
    %c0_5 = arith.constant 0 : index
    %c0_6 = arith.constant 0 : index
    %8 = vector.load %arg4[%c0_5, %c0_6] : memref<1024x32xbf16, #tpu.memory_space<vmem>>, vector<1024x32xbf16>
    %cst = arith.constant dense<0.000000e+00> : vector<16x32xf32>
    %9 = tpu.matmul %7, %8, %cst {dimension_numbers = #tpu.dot_dimension_numbers<[1], [0], [0], [1], [0, 0, 1, 1], [], []>} : vector<16x1024xbf16>, vector<1024x32xbf16>, vector<16x32xf32> -> vector<16x32xf32>
    %c0_7 = arith.constant 0 : index
    %c0_8 = arith.constant 0 : index
    %10 = vector.load %arg5[%c0_7, %c0_8] : memref<1x32xf32, #tpu.memory_space<vmem>>, vector<1x32xf32>
    %11 = vector.broadcast %10 : vector<1x32xf32> to vector<16x32xf32>
    %12 = arith.addf %9, %11 : vector<16x32xf32>
    %13 = math.tanh %12 : vector<16x32xf32>
    %14 = arith.mulf %13, %13 : vector<16x32xf32>
    %cst_9 = arith.constant 1.000000e+00 : f32
    %15 = vector.broadcast %cst_9 : f32 to vector<16x32xf32>
    %16 = arith.subf %15, %14 : vector<16x32xf32>
    %c0_10 = arith.constant 0 : index
    %c0_11 = arith.constant 0 : index
    %17 = vector.load %arg6[%c0_10, %c0_11] : memref<1x32xf32, #tpu.memory_space<vmem>>, vector<1x32xf32>
    %18 = vector.broadcast %17 : vector<1x32xf32> to vector<16x32xf32>
    %19 = arith.mulf %16, %18 : vector<16x32xf32>
    %c0_12 = arith.constant 0 : index
    %c0_13 = arith.constant 0 : index
    %20 = vector.load %arg7[%c0_12, %c0_13] : memref<32x32xf32, #tpu.memory_space<vmem>>, vector<32x32xf32>
    %cst_14 = arith.constant dense<0.000000e+00> : vector<16x32xf32>
    %21 = tpu.matmul %19, %20, %cst_14 {dimension_numbers = #tpu.dot_dimension_numbers<[1], [0], [0], [1], [0, 0, 1, 1], [], []>} : vector<16x32xf32>, vector<32x32xf32>, vector<16x32xf32> -> vector<16x32xf32>
    %22 = arith.mulf %21, %19 : vector<16x32xf32>
    %cst_15 = arith.constant dense<0.000000e+00> : vector<16xf32>
    %23 = vector.multi_reduction <add>, %22, %cst_15 [1] : vector<16x32xf32> to vector<16xf32>
    %24 = vector.shape_cast %23 : vector<16xf32> to vector<16x1xf32>
    %25 = math.sqrt %24 : vector<16x1xf32>
    %cst_16 = arith.constant 1.000000e+00 : f32
    %26 = vector.broadcast %cst_16 : f32 to vector<16x1xf32>
    %27 = arith.subf %25, %26 : vector<16x1xf32>
    %c16_i32 = arith.constant 16 : i32
    %28 = arith.muli %arg0, %c16_i32 : i32
    %29 = tpu.iota {dimensions = array<i32: 0>} : vector<16x1xi32>
    %30 = vector.broadcast %28 : i32 to vector<16x1xi32>
    %31 = arith.addi %30, %29 : vector<16x1xi32>
    %c2_i32 = arith.constant 2 : i32
    %32 = vector.broadcast %c2_i32 : i32 to vector<16x1xi32>
    %33 = arith.cmpi slt, %31, %32 : vector<16x1xi32>
    %34 = arith.mulf %27, %27 : vector<16x1xf32>
    %cst_17 = arith.constant 0.000000e+00 : f32
    %35 = vector.broadcast %cst_17 : f32 to vector<16x1xf32>
    %36 = arith.select %33, %34, %35 : vector<16x1xi1>, vector<16x1xf32>
    %37 = vector.shape_cast %36 : vector<16x1xf32> to vector<1x16x1xf32>
    %cst_18 = arith.constant dense<0.000000e+00> : vector<1xf32>
    %38 = vector.multi_reduction <add>, %37, %cst_18 [1, 2] : vector<1x16x1xf32> to vector<1xf32>
    %39 = vector.shape_cast %38 : vector<1xf32> to vector<1x1x1xf32>
    %40 = vector.extract %39[0, 0, 0] : f32 from vector<1x1x1xf32>
    %41 = vector.broadcast %40 : f32 to vector<1x1x128xf32>
    %c0_19 = arith.constant 0 : index
    %c0_20 = arith.constant 0 : index
    %c0_21 = arith.constant 0 : index
    %42 = vector.load %arg8[%c0_19, %c0_20, %c0_21] : memref<1x1x128xf32, #tpu.memory_space<vmem>>, vector<1x1x128xf32>
    tpu.vector_store %arg8[%c0_19, %c0_20, %c0_21], %41 {strides = array<i32>} : memref<1x1x128xf32, #tpu.memory_space<vmem>>, vector<1x1x128xf32>,
    return
  }
  func.func @transform_0(%arg0: i32) -> (i32, i32) {
    %c0_i32 = arith.constant 0 : i32
    %c0_i32_0 = arith.constant 0 : i32
    return %arg0, %c0_i32 : i32, i32
  }
  func.func @transform_1(%arg0: i32) -> (i32, i32) {
    %c0_i32 = arith.constant 0 : i32
    %c0_i32_0 = arith.constant 0 : i32
    return %arg0, %c0_i32 : i32, i32
  }
  func.func @transform_2(%arg0: i32) -> (i32, i32) {
    %c0_i32 = arith.constant 0 : i32
    %c0_i32_0 = arith.constant 0 : i32
    return %arg0, %c0_i32 : i32, i32
  }
  func.func @transform_3(%arg0: i32) -> (i32, i32) {
    %c0_i32 = arith.constant 0 : i32
    %c0_i32_0 = arith.constant 0 : i32
    %c0_i32_1 = arith.constant 0 : i32
    return %c0_i32, %c0_i32_0 : i32, i32
  }
  func.func @transform_4(%arg0: i32) -> (i32, i32) {
    %c0_i32 = arith.constant 0 : i32
    %c0_i32_0 = arith.constant 0 : i32
    %c0_i32_1 = arith.constant 0 : i32
    return %c0_i32, %c0_i32_0 : i32, i32
  }
  func.func @transform_5(%arg0: i32) -> (i32, i32) {
    %c0_i32 = arith.constant 0 : i32
    %c0_i32_0 = arith.constant 0 : i32
    %c0_i32_1 = arith.constant 0 : i32
    return %c0_i32, %c0_i32_0 : i32, i32
  }
  func.func @transform_6(%arg0: i32) -> (i32, i32) {
    %c0_i32 = arith.constant 0 : i32
    %c0_i32_0 = arith.constant 0 : i32
    %c0_i32_1 = arith.constant 0 : i32
    return %c0_i32, %c0_i32_0 : i32, i32
  }
  func.func @transform_7(%arg0: i32) -> (i32, i32, i32) {
    %c0_i32 = arith.constant 0 : i32
    %c0_i32_0 = arith.constant 0 : i32
    %c0_i32_1 = arith.constant 0 : i32
    return %arg0, %c0_i32, %c0_i32_0 : i32, i32, i32
  }
}

module attributes {stable_mosaic.version = 11 : i64} {
  func.func @_gp_tile_kernel(%arg0: i32, %arg1: memref<16x1xf32, #tpu.memory_space<vmem>>, %arg2: memref<16x1024xbf16, #tpu.memory_space<vmem>>, %arg3: memref<16x1024xbf16, #tpu.memory_space<vmem>>, %arg4: memref<1024x32xbf16, #tpu.memory_space<vmem>>, %arg5: memref<1x32xf32, #tpu.memory_space<vmem>>, %arg6: memref<1x32xf32, #tpu.memory_space<vmem>>, %arg7: memref<32x32xf32, #tpu.memory_space<vmem>>, %arg8: memref<1x1x128xf32, #tpu.memory_space<vmem>>) attributes {dimension_semantics = [#tpu.dimension_semantics<parallel>], iteration_bounds = array<i64: 1>, scalar_prefetch = 0 : i64, scratch_operands = 0 : i64, tpu.core_type = #tpu.core_type<tc>, window_params = [{transform_indices = @transform_0, window_bounds = array<i64: 16, 1>}, {transform_indices = @transform_1, window_bounds = array<i64: 16, 1024>}, {transform_indices = @transform_2, window_bounds = array<i64: 16, 1024>}, {pipeline_mode = #tpu.pipeline_mode<synchronous>, transform_indices = @transform_3, window_bounds = array<i64: 1024, 32>}, {pipeline_mode = #tpu.pipeline_mode<synchronous>, transform_indices = @transform_4, window_bounds = array<i64: 1, 32>}, {pipeline_mode = #tpu.pipeline_mode<synchronous>, transform_indices = @transform_5, window_bounds = array<i64: 1, 32>}, {pipeline_mode = #tpu.pipeline_mode<synchronous>, transform_indices = @transform_6, window_bounds = array<i64: 32, 32>}, {transform_indices = @transform_7, window_bounds = array<i64: 1, 1, 128>}]} {
    %c0 = arith.constant 0 : index
    %c0_0 = arith.constant 0 : index
    %0 = vector.load %arg2[%c0, %c0_0] : memref<16x1024xbf16, #tpu.memory_space<vmem>>, vector<16x1024xbf16>
    %c0_1 = arith.constant 0 : index
    %c0_2 = arith.constant 0 : index
    %1 = vector.load %arg3[%c0_1, %c0_2] : memref<16x1024xbf16, #tpu.memory_space<vmem>>, vector<16x1024xbf16>
    %c0_3 = arith.constant 0 : index
    %c0_4 = arith.constant 0 : index
    %2 = vector.load %arg1[%c0_3, %c0_4] : memref<16x1xf32, #tpu.memory_space<vmem>>, vector<16x1xf32>
    %3 = arith.truncf %2 : vector<16x1xf32> to vector<16x1xbf16>
    %4 = arith.subf %0, %1 : vector<16x1024xbf16>
    %5 = vector.broadcast %3 : vector<16x1xbf16> to vector<16x1024xbf16>
    %6 = arith.mulf %5, %4 : vector<16x1024xbf16>
    %7 = arith.addf %1, %6 : vector<16x1024xbf16>
    %c0_5 = arith.constant 0 : index
    %c0_6 = arith.constant 0 : index
    %8 = vector.load %arg4[%c0_5, %c0_6] : memref<1024x32xbf16, #tpu.memory_space<vmem>>, vector<1024x32xbf16>
    %cst = arith.constant dense<0.000000e+00> : vector<16x32xf32>
    %9 = tpu.matmul %7, %8, %cst {dimension_numbers = #tpu.dot_dimension_numbers<[1], [0], [0], [1], [0, 0, 1, 1], [], []>} : vector<16x1024xbf16>, vector<1024x32xbf16>, vector<16x32xf32> -> vector<16x32xf32>
    %c0_7 = arith.constant 0 : index
    %c0_8 = arith.constant 0 : index
    %10 = vector.load %arg5[%c0_7, %c0_8] : memref<1x32xf32, #tpu.memory_space<vmem>>, vector<1x32xf32>
    %11 = vector.broadcast %10 : vector<1x32xf32> to vector<16x32xf32>
    %12 = arith.addf %9, %11 : vector<16x32xf32>
    %13 = math.tanh %12 : vector<16x32xf32>
    %14 = arith.mulf %13, %13 : vector<16x32xf32>
    %cst_9 = arith.constant 1.000000e+00 : f32
    %15 = vector.broadcast %cst_9 : f32 to vector<16x32xf32>
    %16 = arith.subf %15, %14 : vector<16x32xf32>
    %c0_10 = arith.constant 0 : index
    %c0_11 = arith.constant 0 : index
    %17 = vector.load %arg6[%c0_10, %c0_11] : memref<1x32xf32, #tpu.memory_space<vmem>>, vector<1x32xf32>
    %18 = vector.broadcast %17 : vector<1x32xf32> to vector<16x32xf32>
    %19 = arith.mulf %16, %18 : vector<16x32xf32>
    %c0_12 = arith.constant 0 : index
    %c0_13 = arith.constant 0 : index
    %20 = vector.load %arg7[%c0_12, %c0_13] : memref<32x32xf32, #tpu.memory_space<vmem>>, vector<32x32xf32>
    %cst_14 = arith.constant dense<0.000000e+00> : vector<16x32xf32>
    %21 = tpu.matmul %19, %20, %cst_14 {dimension_numbers = #tpu.dot_dimension_numbers<[1], [0], [0], [1], [0, 0, 1, 1], [], []>} : vector<16x32xf32>, vector<32x32xf32>, vector<16x32xf32> -> vector<16x32xf32>
    %22 = arith.mulf %21, %19 : vector<16x32xf32>
    %cst_15 = arith.constant dense<0.000000e+00> : vector<16xf32>
    %23 = vector.multi_reduction <add>, %22, %cst_15 [1] : vector<16x32xf32> to vector<16xf32>
    %24 = vector.shape_cast %23 : vector<16xf32> to vector<16x1xf32>
    %25 = math.sqrt %24 : vector<16x1xf32>
    %cst_16 = arith.constant 1.000000e+00 : f32
    %26 = vector.broadcast %cst_16 : f32 to vector<16x1xf32>
    %27 = arith.subf %25, %26 : vector<16x1xf32>
    %c16_i32 = arith.constant 16 : i32
    %28 = arith.muli %arg0, %c16_i32 : i32
    %29 = tpu.iota {dimensions = array<i32: 0>} : vector<16x1xi32>
    %30 = vector.broadcast %28 : i32 to vector<16x1xi32>
    %31 = arith.addi %30, %29 : vector<16x1xi32>
    %c2_i32 = arith.constant 2 : i32
    %32 = vector.broadcast %c2_i32 : i32 to vector<16x1xi32>
    %33 = arith.cmpi slt, %31, %32 : vector<16x1xi32>
    %34 = arith.mulf %27, %27 : vector<16x1xf32>
    %cst_17 = arith.constant 0.000000e+00 : f32
    %35 = vector.broadcast %cst_17 : f32 to vector<16x1xf32>
    %36 = arith.select %33, %34, %35 : vector<16x1xi1>, vector<16x1xf32>
    %37 = vector.shape_cast %36 : vector<16x1xf32> to vector<1x16x1xf32>
    %cst_18 = arith.constant dense<0.000000e+00> : vector<1xf32>
    %38 = vector.multi_reduction <add>, %37, %cst_18 [1, 2] : vector<1x16x1xf32> to vector<1xf32>
    %39 = vector.shape_cast %38 : vector<1xf32> to vector<1x1x1xf32>
    %40 = vector.extract %39[0, 0, 0] : f32 from vector<1x1x1xf32>
    %41 = vector.broadcast %40 : f32 to vector<1x1x128xf32>
    %c0_19 = arith.constant 0 : index
    %c0_20 = arith.constant 0 : index
    %c0_21 = arith.constant 0 : index
    %42 = vector.load %arg8[%c0_19, %c0_20, %c0_21] : memref<1x1x128xf32, #tpu.memory_space<vmem>>, vector<1x1x128xf32>
    tpu.vector_store %arg8[%c0_19, %c0_20, %c0_21], %41 {strides = array<i32>} : memref<1x1x128xf32, #tpu.memory_space<vmem>>, vector<1x1x128xf32>,
    return
  }
  func.func @transform_0(%arg0: i32) -> (i32, i32) {
    %c0_i32 = arith.constant 0 : i32
    %c0_i32_0 = arith.constant 0 : i32
    return %arg0, %c0_i32 : i32, i32
  }
  func.func @transform_1(%arg0: i32) -> (i32, i32) {
    %c0_i32 = arith.constant 0 : i32
    %c0_i32_0 = arith.constant 0 : i32
    return %arg0, %c0_i32 : i32, i32
  }
  func.func @transform_2(%arg0: i32) -> (i32, i32) {
    %c0_i32 = arith.constant 0 : i32
    %c0_i32_0 = arith.constant 0 : i32
    return %arg0, %c0_i32 : i32, i32
  }
  func.func @transform_3(%arg0: i32) -> (i32, i32) {
    %c0_i32 = arith.constant 0 : i32
    %c0_i32_0 = arith.constant 0 : i32
    %c0_i32_1 = arith.constant 0 : i32
    return %c0_i32, %c0_i32_0 : i32, i32
  }
  func.func @transform_4(%arg0: i32) -> (i32, i32) {
    %c0_i32 = arith.constant 0 : i32
    %c0_i32_0 = arith.constant 0 : i32
    %c0_i32_1 = arith.constant 0 : i32
    return %c0_i32, %c0_i32_0 : i32, i32
  }
  func.func @transform_5(%arg0: i32) -> (i32, i32) {
    %c0_i32 = arith.constant 0 : i32
    %c0_i32_0 = arith.constant 0 : i32
    %c0_i32_1 = arith.constant 0 : i32
    return %c0_i32, %c0_i32_0 : i32, i32
  }
  func.func @transform_6(%arg0: i32) -> (i32, i32) {
    %c0_i32 = arith.constant 0 : i32
    %c0_i32_0 = arith.constant 0 : i32
    %c0_i32_1 = arith.constant 0 : i32
    return %c0_i32, %c0_i32_0 : i32, i32
  }
  func.func @transform_7(%arg0: i32) -> (i32, i32, i32) {
    %c0_i32 = arith.constant 0 : i32
    %c0_i32_0 = arith.constant 0 : i32
    %c0_i32_1 = arith.constant 0 : i32
    return %arg0, %c0_i32, %c0_i32_0 : i32, i32, i32
  }
}

</mosaic_0001>

<bundles_post_ra>
// kernel: tpu_custom_call.1
= control target key start
LH: loop header
LB: loop body
LE: loop exit
PB: predicated region body
PF: predicated region fallthrough
CT: control target
= control target key end

     0   :  { %v1665_v2 = vmov 0   ;;  %s2086_s0 = inlined_call_operand.vmem [shape: f32[2,1], index: 0, kind: input, shape index: {}]   ;;  %s2087_s1 = inlined_call_operand.vmem [shape: bf16[2,1024], index: 1, kind: input, shape index: {}]   ;;  %s2088_s2 = inlined_call_operand.vmem [shape: bf16[2,1024], index: 2, kind: input, shape index: {}]   ;;  %s2089_s3 = inlined_call_operand.vmem [shape: bf16[1024,32], index: 3, kind: input, shape index: {}]   ;;  %s2090_s4 = inlined_call_operand.vmem [shape: f32[1,32], index: 4, kind: input, shape index: {}]   ;;  %s2091_s5 = inlined_call_operand.vmem [shape: f32[1,32], index: 5, kind: input, shape index: {}]   ;;  %s2092_s6 = inlined_call_operand.vmem [shape: f32[32,32], index: 6, kind: input, shape index: {}]   ;;  %s2093_s7 = inlined_call_operand.hbm [shape: f32[1,1,128], index: 7, kind: output, shape index: {}]  }
   0x1   :  { %v44_v0 = vld [vmem:[%s2086_s0] sm:$0xff]  ;;  %v45_v1 = vld [vmem:[%s2086_s0 + $0x8] sm:$0xff]  ;;  %1570 = vset.pattern.permute.xlu0 %v1665_v2  ;;  %v1579_v12 = vld [vmem:[%s2089_s3 + $0x50] sm:$0xff]  }
   0x2   :  { %v46_v3 = vpack.c.bf16 %v45_v1, %v44_v0  ;;  %v1571_v4 = vld [vmem:[%s2089_s3 + $0x40] sm:$0xff]   ;;  %v1575_v8 = vld [vmem:[%s2089_s3 + $0x48] sm:$0xff]   ;;  %v1580_v13 = vld [vmem:[%s2089_s3 + $0xd0] sm:$0xff]  }
   0x3   :  { %v1572_v5 = vld [vmem:[%s2089_s3 + $0xc0] sm:$0xff]   ;;  %1452 = vmatprep.subr.bf16.mxu0 %v1571_v4  ;;  %v1576_v9 = vld [vmem:[%s2089_s3 + $0xc8] sm:$0xff]   ;;  %v1581_v14 = vld [vmem:[%s2089_s3 + $0x10] sm:$0xff]  }
   0x4   :  { %57 = vperm.xlu0 %1570, %v46_v3   ;;  %v1573_v6 = vld [vmem:[%s2089_s3] sm:$0xff]   ;;  %1474 = vmatprep.subr.bf16.mxu1 %v1572_v5  ;;  %v1577_v10 = vld [vmem:[%s2089_s3 + $0x8] sm:$0xff]   ;;  %v1582_v15 = vld [vmem:[%s2089_s3 + $0x90] sm:$0xff]  }
   0x5   :  { %v1574_v7 = vld [vmem:[%s2089_s3 + $0x80] sm:$0xff]   ;;  %1453 = vmatpush3.bf16.msra.mxu0 %v1573_v6  ;;  %v1578_v11 = vld [vmem:[%s2089_s3 + $0x88] sm:$0xff]   ;;  %v1583_v16 = vld [vmem:[%s2089_s3 + $0x58] sm:$0xff]  }
   0x6   :  { %1475 = vmatpush3.bf16.msra.mxu1 %v1574_v7  ;;  %1454 = vmatprep.subr.bf16.mxu0 %v1575_v8  ;;  %v1584_v17 = vld [vmem:[%s2089_s3 + $0xd8] sm:$0xff]   ;;  %v1587_v20 = vld [vmem:[%s2089_s3 + $0x60] sm:$0xff]   ;;  %v1591_v24 = vld [vmem:[%s2089_s3 + $0x68] sm:$0xff]  }
   0x7   :  { %1476 = vmatprep.subr.bf16.mxu1 %v1576_v9  ;;  %v1585_v18 = vld [vmem:[%s2089_s3 + $0x18] sm:$0xff]   ;;  %v1588_v21 = vld [vmem:[%s2089_s3 + $0xe0] sm:$0xff]   ;;  %v1592_v25 = vld [vmem:[%s2089_s3 + $0xe8] sm:$0xff]  }
   0x8   :  { %v1586_v19 = vld [vmem:[%s2089_s3 + $0x98] sm:$0xff]   ;;  %v1589_v22 = vld [vmem:[%s2089_s3 + $0x20] sm:$0xff]   ;;  %v1593_v26 = vld [vmem:[%s2089_s3 + $0x28] sm:$0xff]  }
   0x9   :  { %1455 = vmatpush3.bf16.msra.mxu0 %v1577_v10  ;;  %v1590_v23 = vld [vmem:[%s2089_s3 + $0xa0] sm:$0xff]   ;;  %v1594_v27 = vld [vmem:[%s2089_s3 + $0xa8] sm:$0xff]   ;;  %v1595_v28 = vld [vmem:[%s2089_s3 + $0x70] sm:$0xff]  }
   0xa   :  { %1477 = vmatpush3.bf16.msra.mxu1 %v1578_v11  ;;  %1456 = vmatprep.subr.bf16.mxu0 %v1579_v12  ;;  %v1596_v29 = vld [vmem:[%s2089_s3 + $0xf0] sm:$0xff]   ;;  %v1599_v32 = vld [vmem:[%s2089_s3 + $0x78] sm:$0xff]   ;;  %v1603_v36 = vld [vmem:[%s2089_s3 + $0x140] sm:$0xff]  }
   0xb   :  { %1478 = vmatprep.subr.bf16.mxu1 %v1580_v13  ;;  %v1597_v30 = vld [vmem:[%s2089_s3 + $0x30] sm:$0xff]   ;;  %v1600_v33 = vld [vmem:[%s2089_s3 + $0xf8] sm:$0xff]   ;;  %v1604_v37 = vld [vmem:[%s2089_s3 + $0x1c0] sm:$0xff]  }
   0xc   :  { %v1598_v31 = vld [vmem:[%s2089_s3 + $0xb0] sm:$0xff]   ;;  %v1601_v34 = vld [vmem:[%s2089_s3 + $0x38] sm:$0xff]  }
   0xd   :  { %1457 = vmatpush3.bf16.msra.mxu0 %v1581_v14  ;;  %v1602_v35 = vld [vmem:[%s2089_s3 + $0xb8] sm:$0xff]  }
   0xe   :  { %1479 = vmatpush3.bf16.msra.mxu1 %v1582_v15  ;;  %1458 = vmatprep.subr.bf16.mxu0 %v1583_v16 }
   0xf   :  { %1480 = vmatprep.subr.bf16.mxu1 %v1584_v17 }
  0x11   :  { %1459 = vmatpush3.bf16.msra.mxu0 %v1585_v18 }
  0x12   :  { %1481 = vmatpush3.bf16.msra.mxu1 %v1586_v19  ;;  %1460 = vmatprep.subr.bf16.mxu0 %v1587_v20 }
  0x13   :  { %1482 = vmatprep.subr.bf16.mxu1 %v1588_v21 }
  0x15   :  { %1461 = vmatpush3.bf16.msra.mxu0 %v1589_v22 }
  0x16   :  { %1483 = vmatpush3.bf16.msra.mxu1 %v1590_v23  ;;  %1462 = vmatprep.subr.bf16.mxu0 %v1591_v24 }
  0x17   :  { %1484 = vmatprep.subr.bf16.mxu1 %v1592_v25 }
  0x19   :  { %1463 = vmatpush3.bf16.msra.mxu0 %v1593_v26 }
  0x1a   :  { %1485 = vmatpush3.bf16.msra.mxu1 %v1594_v27  ;;  %1464 = vmatprep.subr.bf16.mxu0 %v1595_v28 }
  0x1b   :  { %1486 = vmatprep.subr.bf16.mxu1 %v1596_v29 }
  0x1d   :  { %1465 = vmatpush3.bf16.msra.mxu0 %v1597_v30 }
  0x1e   :  { %1487 = vmatpush3.bf16.msra.mxu1 %v1598_v31  ;;  %1466 = vmatprep.subr.bf16.mxu0 %v1599_v32 }
  0x1f   :  { %1488 = vmatprep.subr.bf16.mxu1 %v1600_v33 }
  0x21   :  { %1467 = vmatpush3.bf16.msra.mxu0 %v1601_v34 }
  0x22   :  { %1489 = vmatpush3.bf16.msra.mxu1 %v1602_v35  ;;  %1496 = vmatprep.subr.bf16.mxu0 %v1603_v36 }
  0x23   :  { %1518 = vmatprep.subr.bf16.mxu1 %v1604_v37 }
  0x24   :  { %12 = vsyncpa [#allocation3], 0  ;;  %v28_v38 = vld [vmem:[%s2087_s1] sm:$0xff]  ;;  %v29_v39 = vld [vmem:[%s2087_s1 + $0x8] sm:$0xff]  ;;  %v1666_v42 = vmov 1966171168   ;;  %v79_v44 = vlaneseq }
  0x25   :  { %v30_v40 = vld [vmem:[%s2087_s1 + $0x10] sm:$0xff]  ;;  %v31_v41 = vld [vmem:[%s2087_s1 + $0x18] sm:$0xff]  ;;  %v77_v43 = vunpack.c.l.s4 %v1666_v42  ;;  %v32_v45 = vld [vmem:[%s2087_s1 + $0x20] sm:$0xff]  ;;  %vm1234_vm0 = vcmask 261120   ;;  %vm1353_vm4 = vcmask 7168  }
  0x26   :  { %v33_v46 = vld [vmem:[%s2087_s1 + $0x28] sm:$0xff]  ;;  %v34_v47 = vld [vmem:[%s2087_s1 + $0x30] sm:$0xff]  ;;  %v35_v48 = vld [vmem:[%s2087_s1 + $0x38] sm:$0xff]  ;;  %v1880_v58 = vshrl.u32 %v79_v44, 7 }
  0x27   :  { %v1843_v49 = vld [vmem:[%s2088_s2] sm:$0xff]  ;;  %v1848_v50 = vld [vmem:[%s2088_s2 + $0x8] sm:$0xff]  ;;  %v1853_v51 = vld [vmem:[%s2088_s2 + $0x10] sm:$0xff]  ;;  %v78_v57 = vunpack.c.0.s8 %v77_v43 }
  0x28   :  { %v1858_v52 = vld [vmem:[%s2088_s2 + $0x18] sm:$0xff]  ;;  %v1863_v53 = vld [vmem:[%s2088_s2 + $0x20] sm:$0xff]  ;;  %v1868_v54 = vld [vmem:[%s2088_s2 + $0x28] sm:$0xff]  ;;  %v47_v59 = vsub.bf16 %v28_v38, %v1843_v49  ;;  %v48_v60 = vsub.bf16 %v29_v39, %v1848_v50  ;;  %v49_v61 = vsub.bf16 %v30_v40, %v1853_v51  ;;  %vm1347_vm3 = vcmp.lt.s32.totalorder %v1880_v58, 2 }
  0x29   :  { %v1873_v55 = vld [vmem:[%s2088_s2 + $0x30] sm:$0xff]  ;;  %v1878_v56 = vld [vmem:[%s2088_s2 + $0x38] sm:$0xff]  ;;  %v50_v62 = vsub.bf16 %v31_v41, %v1858_v52  ;;  %v51_v63 = vsub.bf16 %v32_v45, %v1863_v53  ;;  %v52_v0 = vsub.bf16 %v33_v46, %v1868_v54  ;;  %v1891_v3 = vsub.s32 %v78_v57, %v1880_v58 }
  0x2a   :  { %v53_v1 = vsub.bf16 %v34_v47, %v1873_v55  ;;  %v54_v2 = vsub.bf16 %v35_v48, %v1878_v56  ;;  %v68_v4 = vcombine.low %v47_v59, %v48_v60  ;;  %v69_v8 = vcombine.high %v47_v59, %v48_v60 }
  0x2b   :  { %v70_v5 = vcombine.low %v49_v61, %v50_v62  ;;  %v72_v6 = vcombine.low %v51_v63, %v52_v0  ;;  %v71_v9 = vcombine.high %v49_v61, %v50_v62  ;;  %v73_v10 = vcombine.high %v51_v63, %v52_v0 }
  0x2c   :  { %v74_v7 = vcombine.low %v53_v1, %v54_v2  ;;  %v75_v11 = vcombine.high %v53_v1, %v54_v2  ;;  %v82_v12 = vrot.slane %v68_v4, %v1891_v3  ;;  %v89_v16 = vrot.slane %v69_v8, %v1891_v3 }
  0x2d   :  { %v96_v13 = vrot.slane %v70_v5, %v1891_v3  ;;  %v110_v14 = vrot.slane %v72_v6, %v1891_v3  ;;  %v103_v17 = vrot.slane %v71_v9, %v1891_v3  ;;  %v117_v18 = vrot.slane %v73_v10, %v1891_v3 }
  0x2e   :  { %v124_v15 = vrot.slane %v74_v7, %v1891_v3  ;;  %v131_v19 = vrot.slane %v75_v11, %v1891_v3 }
  0x2f   :  { %v132_v20 = vcombine.low %v82_v12, %v96_v13  ;;  %v133_v21 = vcombine.high %v82_v12, %v96_v13  ;;  %v134_v24 = vcombine.low %v89_v16, %v103_v17  ;;  %v135_v25 = vcombine.high %v89_v16, %v103_v17 }
  0x30   :  { %v136_v22 = vcombine.low %v110_v14, %v124_v15  ;;  %v137_v23 = vcombine.high %v110_v14, %v124_v15  ;;  %v138_v26 = vcombine.low %v117_v18, %v131_v19  ;;  %v139_v27 = vcombine.high %v117_v18, %v131_v19 }
  0x31   :  { %v146_v28 = vrot.slane %v132_v20, %v1891_v3  ;;  %v160_v29 = vrot.slane %v133_v21, %v1891_v3  ;;  %v153_v32 = vrot.slane %v134_v24, %v1891_v3  ;;  %v167_v33 = vrot.slane %v135_v25, %v1891_v3 }
  0x32   :  { %v174_v30 = vrot.slane %v136_v22, %v1891_v3  ;;  %v188_v31 = vrot.slane %v137_v23, %v1891_v3  ;;  %v181_v34 = vrot.slane %v138_v26, %v1891_v3  ;;  %v195_v35 = vrot.slane %v139_v27, %v1891_v3 }
  0x34   :  { %v196_v36 = vcombine.low %v146_v28, %v174_v30  ;;  %v197_v37 = vcombine.high %v146_v28, %v174_v30  ;;  %v200_v38 = vcombine.low %v160_v29, %v188_v31  ;;  %v201_v39 = vcombine.high %v160_v29, %v188_v31 }
  0x35   :  { %v198_v40 = vcombine.low %v153_v32, %v181_v34  ;;  %v199_v41 = vcombine.high %v153_v32, %v181_v34  ;;  %v202_v42 = vcombine.low %v167_v33, %v195_v35  ;;  %v203_v43 = vcombine.high %v167_v33, %v195_v35 }
  0x83   :  { %v58_v44 = vpop.permute.xlu0 %57 }
  0x84   :  { %v212_v45 = vmul.bf16 %v196_v36, %v58_v44  ;;  %v213_v46 = vmul.bf16 %v200_v38, %v58_v44  ;;  %v214_v47 = vmul.bf16 %v197_v37, %v58_v44  ;;  %v215_v48 = vmul.bf16 %v201_v39, %v58_v44 }
  0x85   :  { %v216_v57 = vmul.bf16 %v198_v40, %v58_v44  ;;  %v217_v59 = vmul.bf16 %v202_v42, %v58_v44  ;;  %v218_v60 = vmul.bf16 %v199_v41, %v58_v44  ;;  %v219_v61 = vmul.bf16 %v203_v43, %v58_v44 }
  0x86   :  { %v228_v62 = vcombine.low %v212_v45, %v213_v46  ;;  %v229_v63 = vcombine.high %v212_v45, %v213_v46  ;;  %v230_v0 = vcombine.low %v214_v47, %v215_v48  ;;  %v231_v1 = vcombine.high %v214_v47, %v215_v48 }
  0x87   :  { %v232_v2 = vcombine.low %v216_v57, %v217_v59  ;;  %v233_v4 = vcombine.high %v216_v57, %v217_v59  ;;  %v234_v5 = vcombine.low %v218_v60, %v219_v61  ;;  %v235_v6 = vcombine.high %v218_v60, %v219_v61 }
  0x88   :  { %v242_v7 = vrot.slane %v228_v62, %v1891_v3  ;;  %v249_v8 = vrot.slane %v229_v63, %v1891_v3  ;;  %v256_v9 = vrot.slane %v230_v0, %v1891_v3  ;;  %v263_v10 = vrot.slane %v231_v1, %v1891_v3 }
  0x89   :  { %v270_v11 = vrot.slane %v232_v2, %v1891_v3  ;;  %v277_v12 = vrot.slane %v233_v4, %v1891_v3  ;;  %v284_v13 = vrot.slane %v234_v5, %v1891_v3  ;;  %v291_v14 = vrot.slane %v235_v6, %v1891_v3 }
  0x8a   :  { %v292_v15 = vcombine.low %v242_v7, %v256_v9  ;;  %v293_v16 = vcombine.high %v242_v7, %v256_v9  ;;  %v294_v17 = vcombine.low %v249_v8, %v263_v10  ;;  %v295_v18 = vcombine.high %v249_v8, %v263_v10 }
  0x8b   :  { %v296_v19 = vcombine.low %v270_v11, %v284_v13  ;;  %v297_v20 = vcombine.high %v270_v11, %v284_v13  ;;  %v298_v21 = vcombine.low %v277_v12, %v291_v14  ;;  %v299_v22 = vcombine.high %v277_v12, %v291_v14 }
  0x8c   :  { %v306_v23 = vrot.slane %v292_v15, %v1891_v3  ;;  %v313_v24 = vrot.slane %v294_v17, %v1891_v3  ;;  %v320_v25 = vrot.slane %v293_v16, %v1891_v3  ;;  %v327_v26 = vrot.slane %v295_v18, %v1891_v3  ;;  %v1605_v17 = vld [vmem:[%s2089_s3 + $0x100] sm:$0xff]  }
  0x8d   :  { %v334_v27 = vrot.slane %v296_v19, %v1891_v3  ;;  %v341_v28 = vrot.slane %v298_v21, %v1891_v3  ;;  %v348_v29 = vrot.slane %v297_v20, %v1891_v3  ;;  %v355_v30 = vrot.slane %v299_v22, %v1891_v3  ;;  %v1606_v18 = vld [vmem:[%s2089_s3 + $0x180] sm:$0xff]   ;;  %v1607_v19 = vld [vmem:[%s2089_s3 + $0x148] sm:$0xff]  }
  0x8e   :  { %v1608_v20 = vld [vmem:[%s2089_s3 + $0x1c8] sm:$0xff]  }
  0x8f   :  { %v356_v31 = vcombine.low %v306_v23, %v334_v27  ;;  %v357_v32 = vcombine.high %v306_v23, %v334_v27  ;;  %v358_v33 = vcombine.low %v313_v24, %v341_v28  ;;  %v359_v34 = vcombine.high %v313_v24, %v341_v28  ;;  %v1609_v23 = vld [vmem:[%s2089_s3 + $0x108] sm:$0xff]   ;;  %v1613_v27 = vld [vmem:[%s2089_s3 + $0x110] sm:$0xff]  }
  0x90   :  { %v360_v35 = vcombine.low %v320_v25, %v348_v29  ;;  %v361_v36 = vcombine.high %v320_v25, %v348_v29  ;;  %v362_v37 = vcombine.low %v327_v26, %v355_v30  ;;  %v363_v38 = vcombine.high %v327_v26, %v355_v30  ;;  %v1610_v24 = vld [vmem:[%s2089_s3 + $0x188] sm:$0xff]   ;;  %v1611_v25 = vld [vmem:[%s2089_s3 + $0x150] sm:$0xff]   ;;  %v1615_v29 = vld [vmem:[%s2089_s3 + $0x158] sm:$0xff]  }
  0x91   :  { %v372_v39 = vadd.bf16 %v356_v31, %v1843_v49  ;;  %v374_v40 = vadd.bf16 %v357_v32, %v1853_v51  ;;  %v376_v41 = vadd.bf16 %v358_v33, %v1863_v53  ;;  %v378_v42 = vadd.bf16 %v359_v34, %v1873_v55  ;;  %v1612_v26 = vld [vmem:[%s2089_s3 + $0x1d0] sm:$0xff]   ;;  %v1616_v30 = vld [vmem:[%s2089_s3 + $0x1d8] sm:$0xff]   ;;  %v1619_v33 = vld [vmem:[%s2089_s3 + $0x160] sm:$0xff]  }
  0x92   :  { %v373_v43 = vadd.bf16 %v360_v35, %v1848_v50  ;;  %v375_v44 = vadd.bf16 %v361_v36, %v1858_v52  ;;  %v377_v45 = vadd.bf16 %v362_v37, %v1868_v54  ;;  %v379_v46 = vadd.bf16 %v363_v38, %v1878_v56  ;;  %v1614_v28 = vld [vmem:[%s2089_s3 + $0x190] sm:$0xff]   ;;  %v1617_v31 = vld [vmem:[%s2089_s3 + $0x118] sm:$0xff]   ;;  %v1620_v34 = vld [vmem:[%s2089_s3 + $0x1e0] sm:$0xff]  }
  0x93   :  { %v1618_v32 = vld [vmem:[%s2089_s3 + $0x198] sm:$0xff]   ;;  %v1621_v35 = vld [vmem:[%s2089_s3 + $0x120] sm:$0xff]   ;;  %v1623_v37 = vld [vmem:[%s2089_s3 + $0x168] sm:$0xff]  }
  0x94   :  { %v523_v47 = vcombine.low %v372_v39, %v373_v43  ;;  %v525_v48 = vcombine.low %v374_v40, %v375_v44  ;;  %v527_v57 = vcombine.low %v376_v41, %v377_v45  ;;  %v529_v59 = vcombine.low %v378_v42, %v379_v46  ;;  %v1622_v36 = vld [vmem:[%s2089_s3 + $0x1a0] sm:$0xff]   ;;  %v1624_v38 = vld [vmem:[%s2089_s3 + $0x1e8] sm:$0xff]  }
  0x95   :  { %v524_v60 = vcombine.high %v372_v39, %v373_v43  ;;  %v526_v49 = vcombine.high %v374_v40, %v375_v44  ;;  %v528_v61 = vcombine.high %v376_v41, %v377_v45  ;;  %v530_v51 = vcombine.high %v378_v42, %v379_v46  ;;  %v1625_v39 = vld [vmem:[%s2089_s3 + $0x128] sm:$0xff]   ;;  %v1627_v41 = vld [vmem:[%s2089_s3 + $0x170] sm:$0xff]   ;;  %v1631_v45 = vld [vmem:[%s2089_s3 + $0x178] sm:$0xff]  }
  0x96   :  { %v537_v53 = vrot.slane %v523_v47, %v1891_v3  ;;  %v551_v55 = vrot.slane %v525_v48, %v1891_v3  ;;  %v565_v50 = vrot.slane %v527_v57, %v1891_v3  ;;  %v579_v52 = vrot.slane %v529_v59, %v1891_v3  ;;  %v1626_v40 = vld [vmem:[%s2089_s3 + $0x1a8] sm:$0xff]   ;;  %v1628_v42 = vld [vmem:[%s2089_s3 + $0x1f0] sm:$0xff]   ;;  %v1632_v46 = vld [vmem:[%s2089_s3 + $0x1f8] sm:$0xff]  }
  0x97   :  { %v1938_v54 = vrot.slane %v524_v60, %v1891_v3  ;;  %v1941_v56 = vrot.slane %v526_v49, %v1891_v3  ;;  %v1944_v62 = vrot.slane %v528_v61, %v1891_v3  ;;  %v1947_v63 = vrot.slane %v530_v51, %v1891_v3  ;;  %v1629_v43 = vld [vmem:[%s2089_s3 + $0x130] sm:$0xff]   ;;  %v1633_v57 = vld [vmem:[%s2089_s3 + $0x138] sm:$0xff]  }
  0x98   :  { %v588_v0 = vcombine.high %v537_v53, %v551_v55  ;;  %v592_v1 = vcombine.high %v565_v50, %v579_v52  ;;  %v587_v2 = vcombine.low %v537_v53, %v551_v55  ;;  %v591_v4 = vcombine.low %v565_v50, %v579_v52  ;;  %v1630_v44 = vld [vmem:[%s2089_s3 + $0x1b0] sm:$0xff]   ;;  %v1634_v59 = vld [vmem:[%s2089_s3 + $0x1b8] sm:$0xff]   ;;  %v1230_v53 = vld [vmem:[%s2092_s6] sm:$0xff] }
  0x99   :  { %v590_v5 = vcombine.high %v1938_v54, %v1941_v56  ;;  %v594_v6 = vcombine.high %v1944_v62, %v1947_v63  ;;  %v589_v47 = vcombine.low %v1938_v54, %v1941_v56  ;;  %v593_v48 = vcombine.low %v1944_v62, %v1947_v63  ;;  %v1231_v55 = vld [vmem:[%s2092_s6 + $0x8] sm:$0xff]  ;;  %v1233_v52 = vld [vmem:[%s2092_s6 + $0x18] sm:$0xff]  ;;  %v1382_v63 = vld [vmem:[%s2090_s4] ss:$0 sm:$0xff] }
  0x9a   :  { %v615_v7 = vrot.slane %v588_v0, %v1891_v3  ;;  %v643_v8 = vrot.slane %v592_v1, %v1891_v3  ;;  %v601_v9 = vrot.slane %v587_v2, %v1891_v3  ;;  %v629_v10 = vrot.slane %v591_v4, %v1891_v3 }
  0x9b   :  { %v622_v11 = vrot.slane %v590_v5, %v1891_v3  ;;  %v650_v12 = vrot.slane %v594_v6, %v1891_v3  ;;  %v608_v60 = vrot.slane %v589_v47, %v1891_v3  ;;  %v636_v49 = vrot.slane %v593_v48, %v1891_v3  ;;  %v1232_v3 = vld [vmem:[%s2092_s6 + $0x10] sm:$0xff] }
  0x9c   :  { %v655_v13 = vcombine.low %v615_v7, %v643_v8  ;;  %v656_v14 = vcombine.high %v615_v7, %v643_v8  ;;  %v651_v15 = vcombine.low %v601_v9, %v629_v10  ;;  %v652_v16 = vcombine.high %v601_v9, %v629_v10 }
  0x9d   :  { %v657_v21 = vcombine.low %v622_v11, %v650_v12  ;;  %v658_v22 = vcombine.high %v622_v11, %v650_v12  ;;  %v653_v61 = vcombine.low %v608_v60, %v636_v49  ;;  %v654_v51 = vcombine.high %v608_v60, %v636_v49 }
  0x9e   :  { %1083 = vmatprep.mubr.bf16.mxu0 %v655_v13  ;;  %1124 = vmatprep.mubr.bf16.mxu1 %v656_v14  ;;  %v1557_v50 = vpack.c.bf16 %v1231_v55, %v1230_v53  ;;  %v1561_v54 = vpack.c.bf16 %v1233_v52, %v1232_v3 }
  0x9f   :  { %1084 = vmatmul.mubr.bf16.vlgmr.msra.gmra.mrb[0].mxu0 %v651_v15  ;;  %1125 = vmatmul.mubr.bf16.vlgmr.msra.gmra.mrb[0].mxu1 %v652_v16 }
  0xa0   :  { %1497 = vmatpush3.bf16.msra.mxu0 %v1605_v17  ;;  %1519 = vmatpush3.bf16.msra.mxu1 %v1606_v18 }
  0xa1   :  { %1165 = vmatprep.mubr.bf16.mxu0 %v657_v21  ;;  %1206 = vmatprep.mubr.bf16.mxu1 %v658_v22 }
  0xa2   :  { %1498 = vmatprep.subr.bf16.mxu0 %v1607_v19  ;;  %1520 = vmatprep.subr.bf16.mxu1 %v1608_v20 }
  0xa4   :  { %1499 = vmatpush3.bf16.msra.mxu0 %v1609_v23  ;;  %1521 = vmatpush3.bf16.msra.mxu1 %v1610_v24 }
  0xa5   :  { %1500 = vmatprep.subr.bf16.mxu0 %v1611_v25  ;;  %1522 = vmatprep.subr.bf16.mxu1 %v1612_v26 }
  0xa8   :  { %1501 = vmatpush3.bf16.msra.mxu0 %v1613_v27  ;;  %1523 = vmatpush3.bf16.msra.mxu1 %v1614_v28 }
  0xa9   :  { %1502 = vmatprep.subr.bf16.mxu0 %v1615_v29  ;;  %1524 = vmatprep.subr.bf16.mxu1 %v1616_v30 }
  0xac   :  { %1503 = vmatpush3.bf16.msra.mxu0 %v1617_v31  ;;  %1525 = vmatpush3.bf16.msra.mxu1 %v1618_v32 }
  0xad   :  { %1504 = vmatprep.subr.bf16.mxu0 %v1619_v33  ;;  %1526 = vmatprep.subr.bf16.mxu1 %v1620_v34  ;;  %v1447_v34 = vld [vmem:[%s2091_s5] ss:$0 sm:$0xff]  ;;  %s1667_s5 = smov [#allocation2]  }
  0xae   :  { %s1374_s23 = sshll.u32 %s1667_s5, 4  ;;  %s1375_s23 = int_to_ptr.vmem [resolvable:$true] %s1374_s23 }
  0xaf   :  { %s1641_s24 = scalar_lea.vmem %s1375_s23, 16  ;;  %s1645_s25 = scalar_lea.vmem %s1375_s23, 32 }
  0xb0   :  { %1505 = vmatpush3.bf16.msra.mxu0 %v1621_v35  ;;  %1527 = vmatpush3.bf16.msra.mxu1 %v1622_v36  ;;  %p1642_p0 = scmp.ne.s32.totalorder %s1375_s23, %s1641_s24  ;;  %p1646_p1 = scmp.lt.s32.totalorder %s1375_s23, %s1375_s23 }
  0xb1   :  { %1506 = vmatprep.subr.bf16.mxu0 %v1623_v37  ;;  %1528 = vmatprep.subr.bf16.mxu1 %v1624_v38  ;;  %p1647_p2 = scmp.lt.s32.totalorder %s1645_s25, %s1641_s24 }
  0xb3   :  { %p1648_p3 = por %p1647_p2, %p1646_p1 }
  0xb4   :  { %1507 = vmatpush3.bf16.msra.mxu0 %v1625_v39  ;;  %1529 = vmatpush3.bf16.msra.mxu1 %v1626_v40 }
  0xb5   :  { %1508 = vmatprep.subr.bf16.mxu0 %v1627_v41  ;;  %1530 = vmatprep.subr.bf16.mxu1 %v1628_v42  ;;  %p1649_p4 = pnand %p1648_p3, %p1642_p0 }
  0xb8   :  { %1509 = vmatpush3.bf16.msra.mxu0 %v1629_v43  ;;  %1531 = vmatpush3.bf16.msra.mxu1 %v1630_v44 }
  0xb9   :  { %1510 = vmatprep.subr.bf16.mxu0 %v1631_v45  ;;  %1532 = vmatprep.subr.bf16.mxu1 %v1632_v46 }
  0xbc   :  { %1511 = vmatpush3.bf16.msra.mxu0 %v1633_v57  ;;  %1533 = vmatpush3.bf16.msra.mxu1 %v1634_v59 }
  0xbd   :  { %1558 = vmatprep.subr.bf16.mxu0 %v1557_v50 }
  0xbf   :  { %1166 = vmatmul.mubr.bf16.vlgmr.msra.gmra.mrb[4].mxu0 %v653_v61  ;;  %1207 = vmatmul.mubr.bf16.vlgmr.msra.gmra.mrb[4].mxu1 %v654_v51 }
  0xc0   :  { %1560 = vmatpush3.bf16.msra.mxu0 %v1557_v50 }
  0xc1   :  { %1562 = vmatprep.subr.bf16.mxu0 %v1561_v54 }
  0xc4   :  { %1564 = vmatpush3.bf16.msra.mxu0 %v1561_v54 }
 0x172   :  { %v1468_v56 = vpop.f32.mrb[0].mxu0  ;;  %v1490_v62 = vpop.f32.mrb[0].mxu1 }
 0x173   :  { %v1469_v0 = vpop.f32.mrb[1].mxu0  ;;  %v1491_v1 = vpop.f32.mrb[1].mxu1 }
 0x174   :  { %v1470_v2 = vadd.f32 %v1469_v0, %v1468_v56  ;;  %v1492_v4 = vadd.f32 %v1491_v1, %v1490_v62  ;;  %v1471_v5 = vpop.f32.mrb[2].mxu0  ;;  %v1493_v6 = vpop.f32.mrb[2].mxu1 }
 0x175   :  { %v1472_v7 = vpop.f32.mrb[3].mxu0  ;;  %v1494_v8 = vpop.f32.mrb[3].mxu1 }
 0x176   :  { %v1086_v9 = vadd.f32 %v1470_v2, %v1382_v63  ;;  %v1473_v10 = vadd.f32 %v1472_v7, %v1471_v5  ;;  %v1495_v11 = vadd.f32 %v1494_v8, %v1493_v6 }
 0x178   :  { %v1127_v12 = vadd.f32 %v1492_v4, %v1086_v9  ;;  %v1089_v13 = vadd.f32 %v1473_v10, %v1382_v63 }
 0x17a   :  { %v1130_v14 = vadd.f32 %v1495_v11, %v1089_v13 }
 0x192   :  { %v1512_v15 = vpop.f32.mrb[4].mxu0  ;;  %v1534_v16 = vpop.f32.mrb[4].mxu1 }
 0x193   :  { %v1513_v17 = vpop.f32.mrb[5].mxu0  ;;  %v1535_v18 = vpop.f32.mrb[5].mxu1 }
 0x194   :  { %v1514_v19 = vadd.f32 %v1513_v17, %v1512_v15  ;;  %v1536_v20 = vadd.f32 %v1535_v18, %v1534_v16  ;;  %v1515_v21 = vpop.f32.mrb[6].mxu0  ;;  %v1537_v22 = vpop.f32.mrb[6].mxu1 }
 0x195   :  { %v1516_v23 = vpop.f32.mrb[7].mxu0  ;;  %v1538_v24 = vpop.f32.mrb[7].mxu1 }
 0x196   :  { %v1168_v25 = vadd.f32 %v1514_v19, %v1127_v12  ;;  %v1517_v26 = vadd.f32 %v1516_v23, %v1515_v21  ;;  %v1539_v27 = vadd.f32 %v1538_v24, %v1537_v22 }
 0x198   :  { %v1209_v28 = vadd.f32 %v1536_v20, %v1168_v25  ;;  %v1171_v29 = vadd.f32 %v1517_v26, %v1130_v14 }
 0x19a   :  { %1635 = vtanh.f32 %v1209_v28  ;;  %v1212_v30 = vadd.f32 %v1539_v27, %v1171_v29 }
 0x19c   :  { %1637 = vtanh.f32 %v1212_v30 }
 0x1a4   :  { %v1636_v31 = vpop.eup %1635 }
 0x1a5   :  { %v1217_v32 = vmul.f32 %v1636_v31, %v1636_v31 }
 0x1a6   :  { %v1638_v33 = vpop.eup %1637 }
 0x1a7   :  { %v1219_v35 = vsub.f32 1.0, %v1217_v32  ;;  %v1218_v36 = vmul.f32 %v1638_v33, %v1638_v33 }
 0x1a9   :  { %v1220_v37 = vsub.f32 1.0, %v1218_v36  ;;  %v1228_v38 = vmul.f32 %v1447_v34, %v1219_v35 }
 0x1ab   :  { %v1229_v39 = vmul.f32 %v1447_v34, %v1220_v37  ;;  %1554 = vmatprep.mubr.msk.f32.mxu0 %vm1234_vm0, %v1228_v38 }
 0x1ad   :  { %1555 = vmatmul.mubr.msk.f32.vlgmr.msra.gmra.mrb[8].mxu0 %vm1234_vm0, %v1229_v39 }
 0x280   :  { %v1556_v40 = vpop.f32.mrb[8].mxu0 }
 0x281   :  { %v1307_v41 = vpop.f32.mrb[9].mxu0 }
 0x282   :  { %v1316_v42 = vmul.f32 %v1307_v41, %v1228_v38 }
 0x284   :  { %v1318_v43 = vsel %vm1234_vm0, %v1316_v42, 0.0 }
 0x285   :  { %1319 = vadd.xlane.f32.xlu0 %v1318_v43 }
 0x312   :  { %v1320_v44 = vpop.xlane.xlu0 %1319 }
 0x313   :  { %1639 = vrsqrt.f32 %v1320_v44  ;;  %vm1326_vm1 = vcmp.eq.f32.partialorder %v1320_v44, inf  ;;  %v1329_v47 = vand.u32 2147483648, %v1320_v44  ;;  %vm1328_vm2 = vcmp.eq.f32.partialorder %v1320_v44, 0.0 }
 0x31d   :  { %v1640_v45 = vpop.eup %1639 }
 0x31e   :  { %v1325_v46 = vmul.f32 %v1640_v45, %v1320_v44 }
 0x320   :  { %v1327_v48 = vsel %vm1326_vm1, %v1320_v44, %v1325_v46 }
 0x321   :  { %v1330_v57 = vsel %vm1328_vm2, %v1329_v47, %v1327_v48 }
 0x322   :  { %v1450_v59 = vadd.f32 -1.0, %v1330_v57 }
 0x324   :  { %v1349_v60 = vmul.f32 %v1450_v59, %v1450_v59 }
 0x326   :  { %v1351_v49 = vsel %vm1347_vm3, %v1349_v60, 0.0 }
 0x327   :  { %v1354_v61 = vsel %vm1353_vm4, %v1351_v49, 0.0 }
 0x328   :  { %1357 = vadd.xlane.f32.xlu1 %v1354_v61 }
 0x3b5   :  { %v1358_v51 = vpop.xlane.xlu1 %1357 }
 0x3b6   :  { %v1359_v53 = vrot.slane %v1358_v51, 4 }
 0x3b8   :  { %v1360_v55 = vadd.f32 %v1359_v53, %v1358_v51 }
 0x3ba   :  { %v1361_v50 = vrot.slane %v1360_v55, 2 }
 0x3bc   :  { %v1362_v3 = vadd.f32 %v1361_v50, %v1360_v55 }
 0x3be   :  { %v1363_v52 = vrot.slane %v1362_v3, 1 }
 0x3c0   :  { %v1364_v54 = vadd.f32 %v1363_v52, %v1362_v3 }
 0x3c2   :  { %1565 = vpush %v1364_v54 }
 0x3f3   :  { %s1566_s1 = spop %1565 }
 0x3f4   :  { %v1366_v56 = vstv %s1566_s1 }
 0x3f5   :  { %1367 = vst [vmem:[#allocation2] sm:$0x1] %v1366_v56 }
 0x3f6   :  { %1652 = shalt.err (!%p1649_p4)
}
 0x3f7   :  { %s1653_s28 = scalar_lea.hbm %s2093_s7, 16 }
 0x3f8   :  { %p1654_p5 = scmp.ne.s32.totalorder %s2093_s7, %s1653_s28  ;;  %p1657_p6 = scmp.lt.u32.totalorder %s1653_s28, %s2093_s7 }
 0x3fa   :  { %p1659_p7 = pnand %p1657_p6, %p1654_p5 }
 0x3fc   :  { %1662 = shalt.err (!%p1659_p7)
}
 0x3fd   :  { %1377 = dma.vmem_to_hbm [thread:$0]  %s1375_s23, 16, %s2093_s7, [#allocation3]  }
 0x3fe   :  { %1663 = dma.done.wait [#allocation3], 16  }
 0x3ff   :  { %1664 = vsyncadd [#allocation3], 4294967280 }
 0x400   :  { %1381 = vsyncpa [#allocation3], 1 }

// kernel: tpu_custom_call.1
= control target key start
LH: loop header
LB: loop body
LE: loop exit
PB: predicated region body
PF: predicated region fallthrough
CT: control target
= control target key end

     0   :  { %v1665_v2 = vmov 0   ;;  %s2086_s0 = inlined_call_operand.vmem [shape: f32[2,1], index: 0, kind: input, shape index: {}]   ;;  %s2087_s1 = inlined_call_operand.vmem [shape: bf16[2,1024], index: 1, kind: input, shape index: {}]   ;;  %s2088_s2 = inlined_call_operand.vmem [shape: bf16[2,1024], index: 2, kind: input, shape index: {}]   ;;  %s2089_s3 = inlined_call_operand.vmem [shape: bf16[1024,32], index: 3, kind: input, shape index: {}]   ;;  %s2090_s4 = inlined_call_operand.vmem [shape: f32[1,32], index: 4, kind: input, shape index: {}]   ;;  %s2091_s5 = inlined_call_operand.vmem [shape: f32[1,32], index: 5, kind: input, shape index: {}]   ;;  %s2092_s6 = inlined_call_operand.vmem [shape: f32[32,32], index: 6, kind: input, shape index: {}]   ;;  %s2093_s7 = inlined_call_operand.hbm [shape: f32[1,1,128], index: 7, kind: output, shape index: {}]  }
   0x1   :  { %v44_v0 = vld [vmem:[%s2086_s0] sm:$0xff]  ;;  %v45_v1 = vld [vmem:[%s2086_s0 + $0x8] sm:$0xff]  ;;  %1570 = vset.pattern.permute.xlu0 %v1665_v2  ;;  %v1579_v12 = vld [vmem:[%s2089_s3 + $0x50] sm:$0xff]  }
   0x2   :  { %v46_v3 = vpack.c.bf16 %v45_v1, %v44_v0  ;;  %v1571_v4 = vld [vmem:[%s2089_s3 + $0x40] sm:$0xff]   ;;  %v1575_v8 = vld [vmem:[%s2089_s3 + $0x48] sm:$0xff]   ;;  %v1580_v13 = vld [vmem:[%s2089_s3 + $0xd0] sm:$0xff]  }
   0x3   :  { %v1572_v5 = vld [vmem:[%s2089_s3 + $0xc0] sm:$0xff]   ;;  %1452 = vmatprep.subr.bf16.mxu0 %v1571_v4  ;;  %v1576_v9 = vld [vmem:[%s2089_s3 + $0xc8] sm:$0xff]   ;;  %v1581_v14 = vld [vmem:[%s2089_s3 + $0x10] sm:$0xff]  }
   0x4   :  { %57 = vperm.xlu0 %1570, %v46_v3   ;;  %v1573_v6 = vld [vmem:[%s2089_s3] sm:$0xff]   ;;  %1474 = vmatprep.subr.bf16.mxu1 %v1572_v5  ;;  %v1577_v10 = vld [vmem:[%s2089_s3 + $0x8] sm:$0xff]   ;;  %v1582_v15 = vld [vmem:[%s2089_s3 + $0x90] sm:$0xff]  }
   0x5   :  { %v1574_v7 = vld [vmem:[%s2089_s3 + $0x80] sm:$0xff]   ;;  %1453 = vmatpush3.bf16.msra.mxu0 %v1573_v6  ;;  %v1578_v11 = vld [vmem:[%s2089_s3 + $0x88] sm:$0xff]   ;;  %v1583_v16 = vld [vmem:[%s2089_s3 + $0x58] sm:$0xff]  }
   0x6   :  { %1475 = vmatpush3.bf16.msra.mxu1 %v1574_v7  ;;  %1454 = vmatprep.subr.bf16.mxu0 %v1575_v8  ;;  %v1584_v17 = vld [vmem:[%s2089_s3 + $0xd8] sm:$0xff]   ;;  %v1587_v20 = vld [vmem:[%s2089_s3 + $0x60] sm:$0xff]   ;;  %v1591_v24 = vld [vmem:[%s2089_s3 + $0x68] sm:$0xff]  }
   0x7   :  { %1476 = vmatprep.subr.bf16.mxu1 %v1576_v9  ;;  %v1585_v18 = vld [vmem:[%s2089_s3 + $0x18] sm:$0xff]   ;;  %v1588_v21 = vld [vmem:[%s2089_s3 + $0xe0] sm:$0xff]   ;;  %v1592_v25 = vld [vmem:[%s2089_s3 + $0xe8] sm:$0xff]  }
   0x8   :  { %v1586_v19 = vld [vmem:[%s2089_s3 + $0x98] sm:$0xff]   ;;  %v1589_v22 = vld [vmem:[%s2089_s3 + $0x20] sm:$0xff]   ;;  %v1593_v26 = vld [vmem:[%s2089_s3 + $0x28] sm:$0xff]  }
   0x9   :  { %1455 = vmatpush3.bf16.msra.mxu0 %v1577_v10  ;;  %v1590_v23 = vld [vmem:[%s2089_s3 + $0xa0] sm:$0xff]   ;;  %v1594_v27 = vld [vmem:[%s2089_s3 + $0xa8] sm:$0xff]   ;;  %v1595_v28 = vld [vmem:[%s2089_s3 + $0x70] sm:$0xff]  }
   0xa   :  { %1477 = vmatpush3.bf16.msra.mxu1 %v1578_v11  ;;  %1456 = vmatprep.subr.bf16.mxu0 %v1579_v12  ;;  %v1596_v29 = vld [vmem:[%s2089_s3 + $0xf0] sm:$0xff]   ;;  %v1599_v32 = vld [vmem:[%s2089_s3 + $0x78] sm:$0xff]   ;;  %v1603_v36 = vld [vmem:[%s2089_s3 + $0x140] sm:$0xff]  }
   0xb   :  { %1478 = vmatprep.subr.bf16.mxu1 %v1580_v13  ;;  %v1597_v30 = vld [vmem:[%s2089_s3 + $0x30] sm:$0xff]   ;;  %v1600_v33 = vld [vmem:[%s2089_s3 + $0xf8] sm:$0xff]   ;;  %v1604_v37 = vld [vmem:[%s2089_s3 + $0x1c0] sm:$0xff]  }
   0xc   :  { %v1598_v31 = vld [vmem:[%s2089_s3 + $0xb0] sm:$0xff]   ;;  %v1601_v34 = vld [vmem:[%s2089_s3 + $0x38] sm:$0xff]  }
   0xd   :  { %1457 = vmatpush3.bf16.msra.mxu0 %v1581_v14  ;;  %v1602_v35 = vld [vmem:[%s2089_s3 + $0xb8] sm:$0xff]  }
   0xe   :  { %1479 = vmatpush3.bf16.msra.mxu1 %v1582_v15  ;;  %1458 = vmatprep.subr.bf16.mxu0 %v1583_v16 }
   0xf   :  { %1480 = vmatprep.subr.bf16.mxu1 %v1584_v17 }
  0x11   :  { %1459 = vmatpush3.bf16.msra.mxu0 %v1585_v18 }
  0x12   :  { %1481 = vmatpush3.bf16.msra.mxu1 %v1586_v19  ;;  %1460 = vmatprep.subr.bf16.mxu0 %v1587_v20 }
  0x13   :  { %1482 = vmatprep.subr.bf16.mxu1 %v1588_v21 }
  0x15   :  { %1461 = vmatpush3.bf16.msra.mxu0 %v1589_v22 }
  0x16   :  { %1483 = vmatpush3.bf16.msra.mxu1 %v1590_v23  ;;  %1462 = vmatprep.subr.bf16.mxu0 %v1591_v24 }
  0x17   :  { %1484 = vmatprep.subr.bf16.mxu1 %v1592_v25 }
  0x19   :  { %1463 = vmatpush3.bf16.msra.mxu0 %v1593_v26 }
  0x1a   :  { %1485 = vmatpush3.bf16.msra.mxu1 %v1594_v27  ;;  %1464 = vmatprep.subr.bf16.mxu0 %v1595_v28 }
  0x1b   :  { %1486 = vmatprep.subr.bf16.mxu1 %v1596_v29 }
  0x1d   :  { %1465 = vmatpush3.bf16.msra.mxu0 %v1597_v30 }
  0x1e   :  { %1487 = vmatpush3.bf16.msra.mxu1 %v1598_v31  ;;  %1466 = vmatprep.subr.bf16.mxu0 %v1599_v32 }
  0x1f   :  { %1488 = vmatprep.subr.bf16.mxu1 %v1600_v33 }
  0x21   :  { %1467 = vmatpush3.bf16.msra.mxu0 %v1601_v34 }
  0x22   :  { %1489 = vmatpush3.bf16.msra.mxu1 %v1602_v35  ;;  %1496 = vmatprep.subr.bf16.mxu0 %v1603_v36 }
  0x23   :  { %1518 = vmatprep.subr.bf16.mxu1 %v1604_v37 }
  0x24   :  { %12 = vsyncpa [#allocation3], 0  ;;  %v28_v38 = vld [vmem:[%s2087_s1] sm:$0xff]  ;;  %v29_v39 = vld [vmem:[%s2087_s1 + $0x8] sm:$0xff]  ;;  %v1666_v42 = vmov 1966171168   ;;  %v79_v44 = vlaneseq }
  0x25   :  { %v30_v40 = vld [vmem:[%s2087_s1 + $0x10] sm:$0xff]  ;;  %v31_v41 = vld [vmem:[%s2087_s1 + $0x18] sm:$0xff]  ;;  %v77_v43 = vunpack.c.l.s4 %v1666_v42  ;;  %v32_v45 = vld [vmem:[%s2087_s1 + $0x20] sm:$0xff]  ;;  %vm1234_vm0 = vcmask 261120   ;;  %vm1353_vm4 = vcmask 7168  }
  0x26   :  { %v33_v46 = vld [vmem:[%s2087_s1 + $0x28] sm:$0xff]  ;;  %v34_v47 = vld [vmem:[%s2087_s1 + $0x30] sm:$0xff]  ;;  %v35_v48 = vld [vmem:[%s2087_s1 + $0x38] sm:$0xff]  ;;  %v1880_v58 = vshrl.u32 %v79_v44, 7 }
  0x27   :  { %v1843_v49 = vld [vmem:[%s2088_s2] sm:$0xff]  ;;  %v1848_v50 = vld [vmem:[%s2088_s2 + $0x8] sm:$0xff]  ;;  %v1853_v51 = vld [vmem:[%s2088_s2 + $0x10] sm:$0xff]  ;;  %v78_v57 = vunpack.c.0.s8 %v77_v43 }
  0x28   :  { %v1858_v52 = vld [vmem:[%s2088_s2 + $0x18] sm:$0xff]  ;;  %v1863_v53 = vld [vmem:[%s2088_s2 + $0x20] sm:$0xff]  ;;  %v1868_v54 = vld [vmem:[%s2088_s2 + $0x28] sm:$0xff]  ;;  %v47_v59 = vsub.bf16 %v28_v38, %v1843_v49  ;;  %v48_v60 = vsub.bf16 %v29_v39, %v1848_v50  ;;  %v49_v61 = vsub.bf16 %v30_v40, %v1853_v51  ;;  %vm1347_vm3 = vcmp.lt.s32.totalorder %v1880_v58, 2 }
  0x29   :  { %v1873_v55 = vld [vmem:[%s2088_s2 + $0x30] sm:$0xff]  ;;  %v1878_v56 = vld [vmem:[%s2088_s2 + $0x38] sm:$0xff]  ;;  %v50_v62 = vsub.bf16 %v31_v41, %v1858_v52  ;;  %v51_v63 = vsub.bf16 %v32_v45, %v1863_v53  ;;  %v52_v0 = vsub.bf16 %v33_v46, %v1868_v54  ;;  %v1891_v3 = vsub.s32 %v78_v57, %v1880_v58 }
  0x2a   :  { %v53_v1 = vsub.bf16 %v34_v47, %v1873_v55  ;;  %v54_v2 = vsub.bf16 %v35_v48, %v1878_v56  ;;  %v68_v4 = vcombine.low %v47_v59, %v48_v60  ;;  %v69_v8 = vcombine.high %v47_v59, %v48_v60 }
  0x2b   :  { %v70_v5 = vcombine.low %v49_v61, %v50_v62  ;;  %v72_v6 = vcombine.low %v51_v63, %v52_v0  ;;  %v71_v9 = vcombine.high %v49_v61, %v50_v62  ;;  %v73_v10 = vcombine.high %v51_v63, %v52_v0 }
  0x2c   :  { %v74_v7 = vcombine.low %v53_v1, %v54_v2  ;;  %v75_v11 = vcombine.high %v53_v1, %v54_v2  ;;  %v82_v12 = vrot.slane %v68_v4, %v1891_v3  ;;  %v89_v16 = vrot.slane %v69_v8, %v1891_v3 }
  0x2d   :  { %v96_v13 = vrot.slane %v70_v5, %v1891_v3  ;;  %v110_v14 = vrot.slane %v72_v6, %v1891_v3  ;;  %v103_v17 = vrot.slane %v71_v9, %v1891_v3  ;;  %v117_v18 = vrot.slane %v73_v10, %v1891_v3 }
  0x2e   :  { %v124_v15 = vrot.slane %v74_v7, %v1891_v3  ;;  %v131_v19 = vrot.slane %v75_v11, %v1891_v3 }
  0x2f   :  { %v132_v20 = vcombine.low %v82_v12, %v96_v13  ;;  %v133_v21 = vcombine.high %v82_v12, %v96_v13  ;;  %v134_v24 = vcombine.low %v89_v16, %v103_v17  ;;  %v135_v25 = vcombine.high %v89_v16, %v103_v17 }
  0x30   :  { %v136_v22 = vcombine.low %v110_v14, %v124_v15  ;;  %v137_v23 = vcombine.high %v110_v14, %v124_v15  ;;  %v138_v26 = vcombine.low %v117_v18, %v131_v19  ;;  %v139_v27 = vcombine.high %v117_v18, %v131_v19 }
  0x31   :  { %v146_v28 = vrot.slane %v132_v20, %v1891_v3  ;;  %v160_v29 = vrot.slane %v133_v21, %v1891_v3  ;;  %v153_v32 = vrot.slane %v134_v24, %v1891_v3  ;;  %v167_v33 = vrot.slane %v135_v25, %v1891_v3 }
  0x32   :  { %v174_v30 = vrot.slane %v136_v22, %v1891_v3  ;;  %v188_v31 = vrot.slane %v137_v23, %v1891_v3  ;;  %v181_v34 = vrot.slane %v138_v26, %v1891_v3  ;;  %v195_v35 = vrot.slane %v139_v27, %v1891_v3 }
  0x34   :  { %v196_v36 = vcombine.low %v146_v28, %v174_v30  ;;  %v197_v37 = vcombine.high %v146_v28, %v174_v30  ;;  %v200_v38 = vcombine.low %v160_v29, %v188_v31  ;;  %v201_v39 = vcombine.high %v160_v29, %v188_v31 }
  0x35   :  { %v198_v40 = vcombine.low %v153_v32, %v181_v34  ;;  %v199_v41 = vcombine.high %v153_v32, %v181_v34  ;;  %v202_v42 = vcombine.low %v167_v33, %v195_v35  ;;  %v203_v43 = vcombine.high %v167_v33, %v195_v35 }
  0x83   :  { %v58_v44 = vpop.permute.xlu0 %57 }
  0x84   :  { %v212_v45 = vmul.bf16 %v196_v36, %v58_v44  ;;  %v213_v46 = vmul.bf16 %v200_v38, %v58_v44  ;;  %v214_v47 = vmul.bf16 %v197_v37, %v58_v44  ;;  %v215_v48 = vmul.bf16 %v201_v39, %v58_v44 }
  0x85   :  { %v216_v57 = vmul.bf16 %v198_v40, %v58_v44  ;;  %v217_v59 = vmul.bf16 %v202_v42, %v58_v44  ;;  %v218_v60 = vmul.bf16 %v199_v41, %v58_v44  ;;  %v219_v61 = vmul.bf16 %v203_v43, %v58_v44 }
  0x86   :  { %v228_v62 = vcombine.low %v212_v45, %v213_v46  ;;  %v229_v63 = vcombine.high %v212_v45, %v213_v46  ;;  %v230_v0 = vcombine.low %v214_v47, %v215_v48  ;;  %v231_v1 = vcombine.high %v214_v47, %v215_v48 }
  0x87   :  { %v232_v2 = vcombine.low %v216_v57, %v217_v59  ;;  %v233_v4 = vcombine.high %v216_v57, %v217_v59  ;;  %v234_v5 = vcombine.low %v218_v60, %v219_v61  ;;  %v235_v6 = vcombine.high %v218_v60, %v219_v61 }
  0x88   :  { %v242_v7 = vrot.slane %v228_v62, %v1891_v3  ;;  %v249_v8 = vrot.slane %v229_v63, %v1891_v3  ;;  %v256_v9 = vrot.slane %v230_v0, %v1891_v3  ;;  %v263_v10 = vrot.slane %v231_v1, %v1891_v3 }
  0x89   :  { %v270_v11 = vrot.slane %v232_v2, %v1891_v3  ;;  %v277_v12 = vrot.slane %v233_v4, %v1891_v3  ;;  %v284_v13 = vrot.slane %v234_v5, %v1891_v3  ;;  %v291_v14 = vrot.slane %v235_v6, %v1891_v3 }
  0x8a   :  { %v292_v15 = vcombine.low %v242_v7, %v256_v9  ;;  %v293_v16 = vcombine.high %v242_v7, %v256_v9  ;;  %v294_v17 = vcombine.low %v249_v8, %v263_v10  ;;  %v295_v18 = vcombine.high %v249_v8, %v263_v10 }
  0x8b   :  { %v296_v19 = vcombine.low %v270_v11, %v284_v13  ;;  %v297_v20 = vcombine.high %v270_v11, %v284_v13  ;;  %v298_v21 = vcombine.low %v277_v12, %v291_v14  ;;  %v299_v22 = vcombine.high %v277_v12, %v291_v14 }
  0x8c   :  { %v306_v23 = vrot.slane %v292_v15, %v1891_v3  ;;  %v313_v24 = vrot.slane %v294_v17, %v1891_v3  ;;  %v320_v25 = vrot.slane %v293_v16, %v1891_v3  ;;  %v327_v26 = vrot.slane %v295_v18, %v1891_v3  ;;  %v1605_v17 = vld [vmem:[%s2089_s3 + $0x100] sm:$0xff]  }
  0x8d   :  { %v334_v27 = vrot.slane %v296_v19, %v1891_v3  ;;  %v341_v28 = vrot.slane %v298_v21, %v1891_v3  ;;  %v348_v29 = vrot.slane %v297_v20, %v1891_v3  ;;  %v355_v30 = vrot.slane %v299_v22, %v1891_v3  ;;  %v1606_v18 = vld [vmem:[%s2089_s3 + $0x180] sm:$0xff]   ;;  %v1607_v19 = vld [vmem:[%s2089_s3 + $0x148] sm:$0xff]  }
  0x8e   :  { %v1608_v20 = vld [vmem:[%s2089_s3 + $0x1c8] sm:$0xff]  }
  0x8f   :  { %v356_v31 = vcombine.low %v306_v23, %v334_v27  ;;  %v357_v32 = vcombine.high %v306_v23, %v334_v27  ;;  %v358_v33 = vcombine.low %v313_v24, %v341_v28  ;;  %v359_v34 = vcombine.high %v313_v24, %v341_v28  ;;  %v1609_v23 = vld [vmem:[%s2089_s3 + $0x108] sm:$0xff]   ;;  %v1613_v27 = vld [vmem:[%s2089_s3 + $0x110] sm:$0xff]  }
  0x90   :  { %v360_v35 = vcombine.low %v320_v25, %v348_v29  ;;  %v361_v36 = vcombine.high %v320_v25, %v348_v29  ;;  %v362_v37 = vcombine.low %v327_v26, %v355_v30  ;;  %v363_v38 = vcombine.high %v327_v26, %v355_v30  ;;  %v1610_v24 = vld [vmem:[%s2089_s3 + $0x188] sm:$0xff]   ;;  %v1611_v25 = vld [vmem:[%s2089_s3 + $0x150] sm:$0xff]   ;;  %v1615_v29 = vld [vmem:[%s2089_s3 + $0x158] sm:$0xff]  }
  0x91   :  { %v372_v39 = vadd.bf16 %v356_v31, %v1843_v49  ;;  %v374_v40 = vadd.bf16 %v357_v32, %v1853_v51  ;;  %v376_v41 = vadd.bf16 %v358_v33, %v1863_v53  ;;  %v378_v42 = vadd.bf16 %v359_v34, %v1873_v55  ;;  %v1612_v26 = vld [vmem:[%s2089_s3 + $0x1d0] sm:$0xff]   ;;  %v1616_v30 = vld [vmem:[%s2089_s3 + $0x1d8] sm:$0xff]   ;;  %v1619_v33 = vld [vmem:[%s2089_s3 + $0x160] sm:$0xff]  }
  0x92   :  { %v373_v43 = vadd.bf16 %v360_v35, %v1848_v50  ;;  %v375_v44 = vadd.bf16 %v361_v36, %v1858_v52  ;;  %v377_v45 = vadd.bf16 %v362_v37, %v1868_v54  ;;  %v379_v46 = vadd.bf16 %v363_v38, %v1878_v56  ;;  %v1614_v28 = vld [vmem:[%s2089_s3 + $0x190] sm:$0xff]   ;;  %v1617_v31 = vld [vmem:[%s2089_s3 + $0x118] sm:$0xff]   ;;  %v1620_v34 = vld [vmem:[%s2089_s3 + $0x1e0] sm:$0xff]  }
  0x93   :  { %v1618_v32 = vld [vmem:[%s2089_s3 + $0x198] sm:$0xff]   ;;  %v1621_v35 = vld [vmem:[%s2089_s3 + $0x120] sm:$0xff]   ;;  %v1623_v37 = vld [vmem:[%s2089_s3 + $0x168] sm:$0xff]  }
  0x94   :  { %v523_v47 = vcombine.low %v372_v39, %v373_v43  ;;  %v525_v48 = vcombine.low %v374_v40, %v375_v44  ;;  %v527_v57 = vcombine.low %v376_v41, %v377_v45  ;;  %v529_v59 = vcombine.low %v378_v42, %v379_v46  ;;  %v1622_v36 = vld [vmem:[%s2089_s3 + $0x1a0] sm:$0xff]   ;;  %v1624_v38 = vld [vmem:[%s2089_s3 + $0x1e8] sm:$0xff]  }
  0x95   :  { %v524_v60 = vcombine.high %v372_v39, %v373_v43  ;;  %v526_v49 = vcombine.high %v374_v40, %v375_v44  ;;  %v528_v61 = vcombine.high %v376_v41, %v377_v45  ;;  %v530_v51 = vcombine.high %v378_v42, %v379_v46  ;;  %v1625_v39 = vld [vmem:[%s2089_s3 + $0x128] sm:$0xff]   ;;  %v1627_v41 = vld [vmem:[%s2089_s3 + $0x170] sm:$0xff]   ;;  %v1631_v45 = vld [vmem:[%s2089_s3 + $0x178] sm:$0xff]  }
  0x96   :  { %v537_v53 = vrot.slane %v523_v47, %v1891_v3  ;;  %v551_v55 = vrot.slane %v525_v48, %v1891_v3  ;;  %v565_v50 = vrot.slane %v527_v57, %v1891_v3  ;;  %v579_v52 = vrot.slane %v529_v59, %v1891_v3  ;;  %v1626_v40 = vld [vmem:[%s2089_s3 + $0x1a8] sm:$0xff]   ;;  %v1628_v42 = vld [vmem:[%s2089_s3 + $0x1f0] sm:$0xff]   ;;  %v1632_v46 = vld [vmem:[%s2089_s3 + $0x1f8] sm:$0xff]  }
  0x97   :  { %v1938_v54 = vrot.slane %v524_v60, %v1891_v3  ;;  %v1941_v56 = vrot.slane %v526_v49, %v1891_v3  ;;  %v1944_v62 = vrot.slane %v528_v61, %v1891_v3  ;;  %v1947_v63 = vrot.slane %v530_v51, %v1891_v3  ;;  %v1629_v43 = vld [vmem:[%s2089_s3 + $0x130] sm:$0xff]   ;;  %v1633_v57 = vld [vmem:[%s2089_s3 + $0x138] sm:$0xff]  }
  0x98   :  { %v588_v0 = vcombine.high %v537_v53, %v551_v55  ;;  %v592_v1 = vcombine.high %v565_v50, %v579_v52  ;;  %v587_v2 = vcombine.low %v537_v53, %v551_v55  ;;  %v591_v4 = vcombine.low %v565_v50, %v579_v52  ;;  %v1630_v44 = vld [vmem:[%s2089_s3 + $0x1b0] sm:$0xff]   ;;  %v1634_v59 = vld [vmem:[%s2089_s3 + $0x1b8] sm:$0xff]   ;;  %v1230_v53 = vld [vmem:[%s2092_s6] sm:$0xff] }
  0x99   :  { %v590_v5 = vcombine.high %v1938_v54, %v1941_v56  ;;  %v594_v6 = vcombine.high %v1944_v62, %v1947_v63  ;;  %v589_v47 = vcombine.low %v1938_v54, %v1941_v56  ;;  %v593_v48 = vcombine.low %v1944_v62, %v1947_v63  ;;  %v1231_v55 = vld [vmem:[%s2092_s6 + $0x8] sm:$0xff]  ;;  %v1233_v52 = vld [vmem:[%s2092_s6 + $0x18] sm:$0xff]  ;;  %v1382_v63 = vld [vmem:[%s2090_s4] ss:$0 sm:$0xff] }
  0x9a   :  { %v615_v7 = vrot.slane %v588_v0, %v1891_v3  ;;  %v643_v8 = vrot.slane %v592_v1, %v1891_v3  ;;  %v601_v9 = vrot.slane %v587_v2, %v1891_v3  ;;  %v629_v10 = vrot.slane %v591_v4, %v1891_v3 }
  0x9b   :  { %v622_v11 = vrot.slane %v590_v5, %v1891_v3  ;;  %v650_v12 = vrot.slane %v594_v6, %v1891_v3  ;;  %v608_v60 = vrot.slane %v589_v47, %v1891_v3  ;;  %v636_v49 = vrot.slane %v593_v48, %v1891_v3  ;;  %v1232_v3 = vld [vmem:[%s2092_s6 + $0x10] sm:$0xff] }
  0x9c   :  { %v655_v13 = vcombine.low %v615_v7, %v643_v8  ;;  %v656_v14 = vcombine.high %v615_v7, %v643_v8  ;;  %v651_v15 = vcombine.low %v601_v9, %v629_v10  ;;  %v652_v16 = vcombine.high %v601_v9, %v629_v10 }
  0x9d   :  { %v657_v21 = vcombine.low %v622_v11, %v650_v12  ;;  %v658_v22 = vcombine.high %v622_v11, %v650_v12  ;;  %v653_v61 = vcombine.low %v608_v60, %v636_v49  ;;  %v654_v51 = vcombine.high %v608_v60, %v636_v49 }
  0x9e   :  { %1083 = vmatprep.mubr.bf16.mxu0 %v655_v13  ;;  %1124 = vmatprep.mubr.bf16.mxu1 %v656_v14  ;;  %v1557_v50 = vpack.c.bf16 %v1231_v55, %v1230_v53  ;;  %v1561_v54 = vpack.c.bf16 %v1233_v52, %v1232_v3 }
  0x9f   :  { %1084 = vmatmul.mubr.bf16.vlgmr.msra.gmra.mrb[0].mxu0 %v651_v15  ;;  %1125 = vmatmul.mubr.bf16.vlgmr.msra.gmra.mrb[0].mxu1 %v652_v16 }
  0xa0   :  { %1497 = vmatpush3.bf16.msra.mxu0 %v1605_v17  ;;  %1519 = vmatpush3.bf16.msra.mxu1 %v1606_v18 }
  0xa1   :  { %1165 = vmatprep.mubr.bf16.mxu0 %v657_v21  ;;  %1206 = vmatprep.mubr.bf16.mxu1 %v658_v22 }
  0xa2   :  { %1498 = vmatprep.subr.bf16.mxu0 %v1607_v19  ;;  %1520 = vmatprep.subr.bf16.mxu1 %v1608_v20 }
  0xa4   :  { %1499 = vmatpush3.bf16.msra.mxu0 %v1609_v23  ;;  %1521 = vmatpush3.bf16.msra.mxu1 %v1610_v24 }
  0xa5   :  { %1500 = vmatprep.subr.bf16.mxu0 %v1611_v25  ;;  %1522 = vmatprep.subr.bf16.mxu1 %v1612_v26 }
  0xa8   :  { %1501 = vmatpush3.bf16.msra.mxu0 %v1613_v27  ;;  %1523 = vmatpush3.bf16.msra.mxu1 %v1614_v28 }
  0xa9   :  { %1502 = vmatprep.subr.bf16.mxu0 %v1615_v29  ;;  %1524 = vmatprep.subr.bf16.mxu1 %v1616_v30 }
  0xac   :  { %1503 = vmatpush3.bf16.msra.mxu0 %v1617_v31  ;;  %1525 = vmatpush3.bf16.msra.mxu1 %v1618_v32 }
  0xad   :  { %1504 = vmatprep.subr.bf16.mxu0 %v1619_v33  ;;  %1526 = vmatprep.subr.bf16.mxu1 %v1620_v34  ;;  %v1447_v34 = vld [vmem:[%s2091_s5] ss:$0 sm:$0xff]  ;;  %s1667_s5 = smov [#allocation2]  }
  0xae   :  { %s1374_s23 = sshll.u32 %s1667_s5, 4  ;;  %s1375_s23 = int_to_ptr.vmem [resolvable:$true] %s1374_s23 }
  0xaf   :  { %s1641_s24 = scalar_lea.vmem %s1375_s23, 16  ;;  %s1645_s25 = scalar_lea.vmem %s1375_s23, 32 }
  0xb0   :  { %1505 = vmatpush3.bf16.msra.mxu0 %v1621_v35  ;;  %1527 = vmatpush3.bf16.msra.mxu1 %v1622_v36  ;;  %p1642_p0 = scmp.ne.s32.totalorder %s1375_s23, %s1641_s24  ;;  %p1646_p1 = scmp.lt.s32.totalorder %s1375_s23, %s1375_s23 }
  0xb1   :  { %1506 = vmatprep.subr.bf16.mxu0 %v1623_v37  ;;  %1528 = vmatprep.subr.bf16.mxu1 %v1624_v38  ;;  %p1647_p2 = scmp.lt.s32.totalorder %s1645_s25, %s1641_s24 }
  0xb3   :  { %p1648_p3 = por %p1647_p2, %p1646_p1 }
  0xb4   :  { %1507 = vmatpush3.bf16.msra.mxu0 %v1625_v39  ;;  %1529 = vmatpush3.bf16.msra.mxu1 %v1626_v40 }
  0xb5   :  { %1508 = vmatprep.subr.bf16.mxu0 %v1627_v41  ;;  %1530 = vmatprep.subr.bf16.mxu1 %v1628_v42  ;;  %p1649_p4 = pnand %p1648_p3, %p1642_p0 }
  0xb8   :  { %1509 = vmatpush3.bf16.msra.mxu0 %v1629_v43  ;;  %1531 = vmatpush3.bf16.msra.mxu1 %v1630_v44 }
  0xb9   :  { %1510 = vmatprep.subr.bf16.mxu0 %v1631_v45  ;;  %1532 = vmatprep.subr.bf16.mxu1 %v1632_v46 }
  0xbc   :  { %1511 = vmatpush3.bf16.msra.mxu0 %v1633_v57  ;;  %1533 = vmatpush3.bf16.msra.mxu1 %v1634_v59 }
  0xbd   :  { %1558 = vmatprep.subr.bf16.mxu0 %v1557_v50 }
  0xbf   :  { %1166 = vmatmul.mubr.bf16.vlgmr.msra.gmra.mrb[4].mxu0 %v653_v61  ;;  %1207 = vmatmul.mubr.bf16.vlgmr.msra.gmra.mrb[4].mxu1 %v654_v51 }
  0xc0   :  { %1560 = vmatpush3.bf16.msra.mxu0 %v1557_v50 }
  0xc1   :  { %1562 = vmatprep.subr.bf16.mxu0 %v1561_v54 }
  0xc4   :  { %1564 = vmatpush3.bf16.msra.mxu0 %v1561_v54 }
 0x172   :  { %v1468_v56 = vpop.f32.mrb[0].mxu0  ;;  %v1490_v62 = vpop.f32.mrb[0].mxu1 }
 0x173   :  { %v1469_v0 = vpop.f32.mrb[1].mxu0  ;;  %v1491_v1 = vpop.f32.mrb[1].mxu1 }
 0x174   :  { %v1470_v2 = vadd.f32 %v1469_v0, %v1468_v56  ;;  %v1492_v4 = vadd.f32 %v1491_v1, %v1490_v62  ;;  %v1471_v5 = vpop.f32.mrb[2].mxu0  ;;  %v1493_v6 = vpop.f32.mrb[2].mxu1 }
 0x175   :  { %v1472_v7 = vpop.f32.mrb[3].mxu0  ;;  %v1494_v8 = vpop.f32.mrb[3].mxu1 }
 0x176   :  { %v1086_v9 = vadd.f32 %v1470_v2, %v1382_v63  ;;  %v1473_v10 = vadd.f32 %v1472_v7, %v1471_v5  ;;  %v1495_v11 = vadd.f32 %v1494_v8, %v1493_v6 }
 0x178   :  { %v1127_v12 = vadd.f32 %v1492_v4, %v1086_v9  ;;  %v1089_v13 = vadd.f32 %v1473_v10, %v1382_v63 }
 0x17a   :  { %v1130_v14 = vadd.f32 %v1495_v11, %v1089_v13 }
 0x192   :  { %v1512_v15 = vpop.f32.mrb[4].mxu0  ;;  %v1534_v16 = vpop.f32.mrb[4].mxu1 }
 0x193   :  { %v1513_v17 = vpop.f32.mrb[5].mxu0  ;;  %v1535_v18 = vpop.f32.mrb[5].mxu1 }
 0x194   :  { %v1514_v19 = vadd.f32 %v1513_v17, %v1512_v15  ;;  %v1536_v20 = vadd.f32 %v1535_v18, %v1534_v16  ;;  %v1515_v21 = vpop.f32.mrb[6].mxu0  ;;  %v1537_v22 = vpop.f32.mrb[6].mxu1 }
 0x195   :  { %v1516_v23 = vpop.f32.mrb[7].mxu0  ;;  %v1538_v24 = vpop.f32.mrb[7].mxu1 }
 0x196   :  { %v1168_v25 = vadd.f32 %v1514_v19, %v1127_v12  ;;  %v1517_v26 = vadd.f32 %v1516_v23, %v1515_v21  ;;  %v1539_v27 = vadd.f32 %v1538_v24, %v1537_v22 }
 0x198   :  { %v1209_v28 = vadd.f32 %v1536_v20, %v1168_v25  ;;  %v1171_v29 = vadd.f32 %v1517_v26, %v1130_v14 }
 0x19a   :  { %1635 = vtanh.f32 %v1209_v28  ;;  %v1212_v30 = vadd.f32 %v1539_v27, %v1171_v29 }
 0x19c   :  { %1637 = vtanh.f32 %v1212_v30 }
 0x1a4   :  { %v1636_v31 = vpop.eup %1635 }
 0x1a5   :  { %v1217_v32 = vmul.f32 %v1636_v31, %v1636_v31 }
 0x1a6   :  { %v1638_v33 = vpop.eup %1637 }
 0x1a7   :  { %v1219_v35 = vsub.f32 1.0, %v1217_v32  ;;  %v1218_v36 = vmul.f32 %v1638_v33, %v1638_v33 }
 0x1a9   :  { %v1220_v37 = vsub.f32 1.0, %v1218_v36  ;;  %v1228_v38 = vmul.f32 %v1447_v34, %v1219_v35 }
 0x1ab   :  { %v1229_v39 = vmul.f32 %v1447_v34, %v1220_v37  ;;  %1554 = vmatprep.mubr.msk.f32.mxu0 %vm1234_vm0, %v1228_v38 }
 0x1ad   :  { %1555 = vmatmul.mubr.msk.f32.vlgmr.msra.gmra.mrb[8].mxu0 %vm1234_vm0, %v1229_v39 }
 0x280   :  { %v1556_v40 = vpop.f32.mrb[8].mxu0 }
 0x281   :  { %v1307_v41 = vpop.f32.mrb[9].mxu0 }
 0x282   :  { %v1316_v42 = vmul.f32 %v1307_v41, %v1228_v38 }
 0x284   :  { %v1318_v43 = vsel %vm1234_vm0, %v1316_v42, 0.0 }
 0x285   :  { %1319 = vadd.xlane.f32.xlu0 %v1318_v43 }
 0x312   :  { %v1320_v44 = vpop.xlane.xlu0 %1319 }
 0x313   :  { %1639 = vrsqrt.f32 %v1320_v44  ;;  %vm1326_vm1 = vcmp.eq.f32.partialorder %v1320_v44, inf  ;;  %v1329_v47 = vand.u32 2147483648, %v1320_v44  ;;  %vm1328_vm2 = vcmp.eq.f32.partialorder %v1320_v44, 0.0 }
 0x31d   :  { %v1640_v45 = vpop.eup %1639 }
 0x31e   :  { %v1325_v46 = vmul.f32 %v1640_v45, %v1320_v44 }
 0x320   :  { %v1327_v48 = vsel %vm1326_vm1, %v1320_v44, %v1325_v46 }
 0x321   :  { %v1330_v57 = vsel %vm1328_vm2, %v1329_v47, %v1327_v48 }
 0x322   :  { %v1450_v59 = vadd.f32 -1.0, %v1330_v57 }
 0x324   :  { %v1349_v60 = vmul.f32 %v1450_v59, %v1450_v59 }
 0x326   :  { %v1351_v49 = vsel %vm1347_vm3, %v1349_v60, 0.0 }
 0x327   :  { %v1354_v61 = vsel %vm1353_vm4, %v1351_v49, 0.0 }
 0x328   :  { %1357 = vadd.xlane.f32.xlu1 %v1354_v61 }
 0x3b5   :  { %v1358_v51 = vpop.xlane.xlu1 %1357 }
 0x3b6   :  { %v1359_v53 = vrot.slane %v1358_v51, 4 }
 0x3b8   :  { %v1360_v55 = vadd.f32 %v1359_v53, %v1358_v51 }
 0x3ba   :  { %v1361_v50 = vrot.slane %v1360_v55, 2 }
 0x3bc   :  { %v1362_v3 = vadd.f32 %v1361_v50, %v1360_v55 }
 0x3be   :  { %v1363_v52 = vrot.slane %v1362_v3, 1 }
 0x3c0   :  { %v1364_v54 = vadd.f32 %v1363_v52, %v1362_v3 }
 0x3c2   :  { %1565 = vpush %v1364_v54 }
 0x3f3   :  { %s1566_s1 = spop %1565 }
 0x3f4   :  { %v1366_v56 = vstv %s1566_s1 }
 0x3f5   :  { %1367 = vst [vmem:[#allocation2] sm:$0x1] %v1366_v56 }
 0x3f6   :  { %1652 = shalt.err (!%p1649_p4)
}
 0x3f7   :  { %s1653_s28 = scalar_lea.hbm %s2093_s7, 16 }
 0x3f8   :  { %p1654_p5 = scmp.ne.s32.totalorder %s2093_s7, %s1653_s28  ;;  %p1657_p6 = scmp.lt.u32.totalorder %s1653_s28, %s2093_s7 }
 0x3fa   :  { %p1659_p7 = pnand %p1657_p6, %p1654_p5 }
 0x3fc   :  { %1662 = shalt.err (!%p1659_p7)
}
 0x3fd   :  { %1377 = dma.vmem_to_hbm [thread:$0]  %s1375_s23, 16, %s2093_s7, [#allocation3]  }
 0x3fe   :  { %1663 = dma.done.wait [#allocation3], 16  }
 0x3ff   :  { %1664 = vsyncadd [#allocation3], 4294967280 }
 0x400   :  { %1381 = vsyncpa [#allocation3], 1 }

</bundles_post_ra>
